<compile_context>
chip_gen: v6e
topology: v6e:2x2x1
jax: 0.10.0
libtpu: 0.0.40
codegen_flags: <defaults>
</compile_context>

<pallas_src>
import functools

import jax
import jax.numpy as jnp
from jax.experimental import pallas as pl
from jax.experimental.pallas import tpu as pltpu


def _round_up(x, m):
    return ((x + m - 1) // m) * m


def _pick_tile(n, *, want_two_blocks=False, candidates=(512, 256, 128)):
    """Largest candidate tile dividing n (preferring >=2 blocks when asked); else full dim."""
    if want_two_blocks:
        for t in candidates:
            if n % t == 0 and n // t >= 2:
                return t
    for t in candidates:
        if n % t == 0:
            return t
    return n


def _vmem_budget(tm, tk, fout, out_bytes):
    """Rough double-buffered VMEM footprint of one aggregation step, with headroom."""
    need = 2 * (tm * tk            # int8 A tile
                + tm * 4           # 1/deg tile (f32)
                + tk * fout * 2    # bf16 XW tile
                + fout * 4         # bias
                + tm * fout * out_bytes)
    need += tm * fout * 4          # f32 accumulator scratch
    # >= default scoped limit everywhere, <= 48 MiB so v7x (64 MiB physical) never spills.
    return int(min(max(4 * need, 32 * 1024 * 1024), 48 * 1024 * 1024))


# --------------------- per-layer XW precompute kernel (messages) ----------------------- #

def _xw_kernel(x_ref, w_ref, o_ref):
    # XW[e, s-tile] = X[s-tile] @ W[e]   (bf16 MXU inputs, f32 accumulation, bf16 out)
    o_ref[0] = jnp.dot(x_ref[...], w_ref[0],
                       preferred_element_type=jnp.float32).astype(o_ref.dtype)


def precompute_xw(x_bf, w_bf, *, tile_s=None):
    """(E, Ns, fout) bf16 slab of per-relation messages XW[e] = X @ W[e], computed once."""
    Ns, fin = x_bf.shape
    E, fin2, fout = w_bf.shape
    assert fin == fin2
    ts = tile_s or _pick_tile(Ns, want_two_blocks=True)
    assert Ns % ts == 0 and (ts % 8 == 0 or ts == Ns)
    return pl.pallas_call(
        _xw_kernel,
        out_shape=jax.ShapeDtypeStruct((E, Ns, fout), jnp.bfloat16),
        grid_spec=pltpu.PrefetchScalarGridSpec(
            num_scalar_prefetch=0,
            grid=(E, Ns // ts),                       # W[e] block index constant across s
            in_specs=[pl.BlockSpec((ts, fin), lambda e, s: (s, 0)),
                      pl.BlockSpec((1, fin, fout), lambda e, s: (e, 0, 0))],
            out_specs=pl.BlockSpec((1, ts, fout), lambda e, s: (e, s, 0)),
        ),
        compiler_params=pltpu.CompilerParams(
            dimension_semantics=("parallel", "parallel")),
    )(x_bf, w_bf)


# ------------------- fused relation-aggregation kernel (per layer) --------------------- #

def _agg_kernel(a_ref, dinv_ref, msg_ref, b_ref, o_ref, acc_ref, *, relu):
    """acc[i] += dinv[r, i-tile] * (A_int8[r, i-tile, k-tile] @ XW[r, k-tile]);
    bias + activation epilogue at the last (relation, K) step of each dst tile."""
    r = pl.program_id(1)
    k = pl.program_id(2)

    @pl.when(jnp.logical_and(r == 0, k == 0))
    def _():
        acc_ref[...] = jnp.zeros_like(acc_ref)

    a = a_ref[0].astype(jnp.bfloat16)                    # {0,1} int8 -> bf16 (exact, VPU)
    part = jnp.dot(a, msg_ref[0], preferred_element_type=jnp.float32)
    acc_ref[...] += dinv_ref[0] * part                   # right-norm: per-dst-row 1/deg

    @pl.when(jnp.logical_and(r == pl.num_programs(1) - 1,
                             k == pl.num_programs(2) - 1))
    def _():
        y = acc_ref[...] + b_ref[...]                    # f32 epilogue
        if relu:
            y = jnp.maximum(y, 0.0)
        o_ref[...] = y.astype(o_ref.dtype)               # bf16 intermediates, f32 final


def rel_aggregate(a_i8, dinv, msgs, bias, *, relu, out_dtype,
                  tile_m=None, tile_k=None):
    """out = act( sum_e dinv[e] * (A[e] @ msgs[e]) + bias ) in a single pallas_call."""
    E, Np, Ns = a_i8.shape
    Em, Ns2, fout = msgs.shape
    assert Ns == Ns2 and Em in (1, E)
    assert dinv.shape == (E, Np, 1)
    tm = tile_m or _pick_tile(Np, want_two_blocks=True)   # >=2 dst blocks (v7x megacore)
    tk = tile_k or _pick_tile(Ns)                         # biggest src tile that divides
    assert Np % tm == 0 and Ns % tk == 0
    assert tm % 32 == 0 or tm == Np                       # int8 sublane tiling
    assert tk % 128 == 0 or tk == Ns                      # lane tiling
    assert fout % 128 == 0                                # lane-dense output / full MXU cols

    msg_map = (lambda i, r, k: (0, k, 0)) if Em == 1 else (lambda i, r, k: (r, k, 0))
    out_bytes = jnp.dtype(out_dtype).itemsize

    return pl.pallas_call(
        functools.partial(_agg_kernel, relu=relu),
        out_shape=jax.ShapeDtypeStruct((Np, fout), out_dtype),
        grid_spec=pltpu.PrefetchScalarGridSpec(
            num_scalar_prefetch=0,
            grid=(Np // tm, E, Ns // tk),                 # (dst tiles, relations, src tiles)
            in_specs=[
                pl.BlockSpec((1, tm, tk), lambda i, r, k: (r, i, k)),   # A (int8 {0,1})
                pl.BlockSpec((1, tm, 1), lambda i, r, k: (r, i, 0)),    # 1/deg (f32)
                pl.BlockSpec((1, tk, fout), msg_map),                   # XW or X (bf16)
                pl.BlockSpec((1, fout), lambda i, r, k: (0, 0)),        # bias (f32)
            ],
            out_specs=pl.BlockSpec((tm, fout), lambda i, r, k: (i, 0)),
            scratch_shapes=[pltpu.VMEM((tm, fout), jnp.float32)],
        ),
        compiler_params=pltpu.CompilerParams(
            dimension_semantics=("parallel", "arbitrary", "arbitrary"),
            vmem_limit_bytes=_vmem_budget(tm, tk, fout, out_bytes)),
    )(a_i8, dinv, msgs, bias.reshape(1, fout).astype(jnp.float32))


# ------------------------------ model forward (JAX glue) ------------------------------- #

def node_classifier_forward(a_i8, dinv, x0_bf, rel_idx, params, *, cfg,
                            cat_start, cat_count, out_dim):
    h = x0_bf                                             # bf16 padded node slab
    n_layers = len(cfg)
    for li, (p, (use_weight, relu)) in enumerate(zip(params, cfg)):
        out_dtype = jnp.float32 if li == n_layers - 1 else jnp.bfloat16
        x_bf = h.astype(jnp.bfloat16)
        if use_weight:
            if "coeff" in p:      # basis decomposition: W_rel = sum_b coeff[rel,b]*basis[b]
                w_rel = jnp.einsum("rb,bio->rio", p["coeff"], p["basis"])
            else:                 # direct per-relation weights (num_bases >= num_rels)
                w_rel = p["weight"]
            w_bf = w_rel[rel_idx].astype(jnp.bfloat16)    # gather per canonical etype
            msgs = precompute_xw(x_bf, w_bf)              # (E, Np, Fp) bf16, once per layer
        else:
            msgs = x_bf[None]                             # GraphConv(weight=False): share X
        h = rel_aggregate(a_i8, dinv, msgs, p["bias"], relu=relu, out_dtype=out_dtype)
    # not training and not explain_node -> return h[self.category]
    return h[cat_start:cat_start + cat_count, :out_dim]


def reference_forward(a_i8, dinv, x0_bf, rel_idx, params, cfg,
                      cat_start, cat_count, out_dim):
    """Pure XLA reference using the same padded slabs / bf16 casts as the kernels."""
    h = x0_bf
    a_bf = a_i8.astype(jnp.bfloat16)
    E = a_i8.shape[0]
    n_layers = len(cfg)
    for li, (p, (use_weight, relu)) in enumerate(zip(params, cfg)):
        x_bf = h.astype(jnp.bfloat16)
        if use_weight:
            if "coeff" in p:
                w_rel = jnp.einsum("rb,bio->rio", p["coeff"], p["basis"])
            else:
                w_rel = p["weight"]
            w_bf = w_rel[rel_idx].astype(jnp.bfloat16)
            xw = jnp.einsum("sf,efo->eso", x_bf, w_bf,
                            preferred_element_type=jnp.float32).astype(jnp.bfloat16)
        else:
            xw = jnp.broadcast_to(x_bf[None], (E,) + x_bf.shape)
        msgs = jnp.einsum("ens,eso->eno", a_bf, xw, preferred_element_type=jnp.float32)
        y = (dinv * msgs).sum(axis=0) + p["bias"][None, :]
        if relu:
            y = jnp.maximum(y, 0.0)
        h = y.astype(jnp.float32 if li == n_layers - 1 else jnp.bfloat16)
    return h[cat_start:cat_start + cat_count, :out_dim]


# ----------------------------------- init helpers -------------------------------------- #

def xavier_uniform(key, shape, gain=1.0):
    if len(shape) == 2:
        fan_out, fan_in = shape
    else:  # torch convention: fan_in = size(1)*rest, fan_out = size(0)*rest
        rec = 1
        for s in shape[2:]:
            rec *= s
        fan_in, fan_out = shape[1] * rec, shape[0] * rec
    bound = gain * jnp.sqrt(6.0 / (fan_in + fan_out))
    return jax.random.uniform(key, shape, jnp.float32, -bound, bound)


# -------------------------------------- main ------------------------------------------- #

if __name__ == "__main__":
    key = jax.random.PRNGKey(0)

    # Small synthetic heterograph (replaces the DGL graph object).
    num_nodes = {"author": 130, "paper": 150, "venue": 60}
    ntypes = list(num_nodes.keys())
    canonical_etypes = [
        ("author", "writes", "paper"),
        ("paper", "written-by", "author"),
        ("paper", "published-in", "venue"),
        ("venue", "publishes", "paper"),
    ]
    rel_names = sorted({r for _, r, _ in canonical_etypes})
    rel_idx = jnp.asarray([rel_names.index(r) for _, r, _ in canonical_etypes], jnp.int32)

    h_dim, out_dim, num_bases, num_hidden_layers = 32, 8, 2, 1
    category = "paper"
    relu_gain = float(jnp.sqrt(2.0))

    # ---- pad everything ONCE at setup: 128-aligned node slab, 128-lane features ----
    NODE_ALIGN, FEAT_ALIGN = 128, 128
    offsets, off = {}, 0
    for nt in ntypes:
        offsets[nt] = off
        off += num_nodes[nt]
    Np = _round_up(off, NODE_ALIGN)                       # packed + padded node count (384)
    Fp = _round_up(max(h_dim, out_dim), FEAT_ALIGN)       # lane-dense feature width (128)

    # Per-canonical-etype adjacency: int8 {0,1} (halves the dominant A HBM stream), with the
    # per-(relation, dst-row) right-normalization 1/deg kept as a separate f32 column vector.
    E = len(canonical_etypes)
    a_i8 = jnp.zeros((E, Np, Np), jnp.int8)
    dinv = jnp.ones((E, Np, 1), jnp.float32)
    for e, (stype, _, dtype) in enumerate(canonical_etypes):
        key, k = jax.random.split(key)
        a = jax.random.bernoulli(k, 0.2, (num_nodes[dtype], num_nodes[stype]))
        deg = jnp.maximum(a.sum(axis=1, keepdims=True).astype(jnp.float32), 1.0)
        a_i8 = a_i8.at[e,
                       offsets[dtype]:offsets[dtype] + num_nodes[dtype],
                       offsets[stype]:offsets[stype] + num_nodes[stype]].set(a.astype(jnp.int8))
        dinv = dinv.at[e,
                       offsets[dtype]:offsets[dtype] + num_nodes[dtype], :].set(1.0 / deg)

    # RelGraphEmbed: xavier_uniform(gain=relu) per ntype, packed into the padded slab.
    x0 = jnp.zeros((Np, Fp), jnp.float32)
    for nt in ntypes:
        key, k = jax.random.split(key)
        emb = xavier_uniform(k, (num_nodes[nt], h_dim), gain=relu_gain)
        x0 = x0.at[offsets[nt]:offsets[nt] + num_nodes[nt], :h_dim].set(emb)
    x0_bf = x0.astype(jnp.bfloat16)

    nrel = len(rel_names)
    use_basis = num_bases < nrel                          # 2 < 4 -> basis decomposition

    def make_bias(key, fout_active):
        key, k = jax.random.split(key)
        b = jnp.zeros((Fp,), jnp.float32)                 # padded feature cols stay 0
        b = b.at[:fout_active].set(0.1 * jax.random.normal(k, (fout_active,), jnp.float32))
        return key, b

    params, cfg = [], []
    # layer 0: GraphConv(weight=False) + shared bias + ReLU
    key, b0 = make_bias(key, h_dim)
    params.append({"bias": b0})
    cfg.append((False, True))

    def make_weighted_layer(key, fin, fout, relu):
        key, k1, k2 = jax.random.split(key, 3)
        key, b = make_bias(key, fout)
        if use_basis:
            basis = jnp.zeros((num_bases, Fp, Fp), jnp.float32)
            basis = basis.at[:, :fin, :fout].set(
                xavier_uniform(k1, (num_bases, fin, fout), gain=relu_gain))
            coeff = xavier_uniform(k2, (nrel, num_bases))
            p = {"basis": basis, "coeff": coeff, "bias": b}
        else:
            w = jnp.zeros((nrel, Fp, Fp), jnp.float32)
            w = w.at[:, :fin, :fout].set(xavier_uniform(k1, (nrel, fin, fout), gain=relu_gain))
            p = {"weight": w, "bias": b}
        return key, p, (True, relu)

    for _ in range(num_hidden_layers):                    # hidden: h_dim -> h_dim, relu
        key, p, c = make_weighted_layer(key, h_dim, h_dim, True)
        params.append(p); cfg.append(c)
    key, p, c = make_weighted_layer(key, h_dim, out_dim, False)   # out: h_dim -> out_dim
    params.append(p); cfg.append(c)

    # TODO(synk): self_loop branch (loop_weight), training-mode dict return and the DGL
    #             minibatch inference() path are not emitted (defaults/eval mode).
    # TODO(synk): block-sparse/ragged A packing with scalar-prefetch offset tables (cuts HBM
    #             traffic from E*Np^2 to sum_r ndst_r*nsrc_r) is not implemented yet; the
    #             dense int8 slab is streamed in (tm, tk) tiles instead.

    fwd = jax.jit(functools.partial(
        node_classifier_forward,
        cfg=tuple(cfg),
        cat_start=offsets[category],
        cat_count=num_nodes[category],
        out_dim=out_dim))

    logits = fwd(a_i8, dinv, x0_bf, rel_idx, params)
    logits = jax.block_until_ready(logits)

    ref = reference_forward(a_i8, dinv, x0_bf, rel_idx, params, cfg,
                            offsets[category], num_nodes[category], out_dim)

    assert logits.shape == (num_nodes[category], out_dim), logits.shape
    assert logits.dtype == jnp.float32
    assert bool(jnp.all(jnp.isfinite(logits)))
    assert bool(jnp.allclose(logits, ref, rtol=2e-2, atol=2e-2)), \
        float(jnp.max(jnp.abs(logits - ref)))
    print("KERNEL_OK")
</pallas_src>

<mosaic_0001>
module attributes {stable_mosaic.version = 11 : i64} {
  func.func @_agg_kernel(%arg0: i32, %arg1: i32, %arg2: i32, %arg3: memref<1x128x128xi8, #tpu.memory_space<vmem>>, %arg4: memref<1x128x1xf32, #tpu.memory_space<vmem>>, %arg5: memref<1x128x128xbf16, #tpu.memory_space<vmem>>, %arg6: memref<1x128xf32, #tpu.memory_space<vmem>>, %arg7: memref<128x128xbf16, #tpu.memory_space<vmem>>, %arg8: memref<128x128xf32, #tpu.memory_space<vmem>>) attributes {dimension_semantics = [#tpu.dimension_semantics<parallel>, #tpu.dimension_semantics<arbitrary>, #tpu.dimension_semantics<arbitrary>], iteration_bounds = array<i64: 3, 4, 3>, scalar_prefetch = 0 : i64, scratch_operands = 1 : i64, tpu.core_type = #tpu.core_type<tc>, window_params = [{transform_indices = @transform_0, window_bounds = array<i64: 1, 128, 128>}, {transform_indices = @transform_1, window_bounds = array<i64: 1, 128, 1>}, {transform_indices = @transform_2, window_bounds = array<i64: 1, 128, 128>}, {pipeline_mode = #tpu.pipeline_mode<synchronous>, transform_indices = @transform_3, window_bounds = array<i64: 1, 128>}, {transform_indices = @transform_4, window_bounds = array<i64: 128, 128>}]} {
    %c0_i32 = arith.constant 0 : i32
    %0 = arith.cmpi eq, %arg1, %c0_i32 : i32
    %c0_i32_0 = arith.constant 0 : i32
    %1 = arith.cmpi eq, %arg2, %c0_i32_0 : i32
    %2 = arith.andi %0, %1 : i1
    %3 = arith.extui %2 : i1 to i32
    %c0_i32_1 = arith.constant 0 : i32
    %4 = arith.cmpi ne, %3, %c0_i32_1 : i32
    scf.if %4 {
      %cst_15 = arith.constant 0.000000e+00 : f32
      %23 = vector.broadcast %cst_15 : f32 to vector<128x128xf32>
      %c0_16 = arith.constant 0 : index
      %c0_17 = arith.constant 0 : index
      %24 = vector.load %arg8[%c0_16, %c0_17] : memref<128x128xf32, #tpu.memory_space<vmem>>, vector<128x128xf32>
      tpu.vector_store %arg8[%c0_16, %c0_17], %23 {strides = array<i32>} : memref<128x128xf32, #tpu.memory_space<vmem>>, vector<128x128xf32>,
    } else {
    }
    %c0 = arith.constant 0 : index
    %c0_2 = arith.constant 0 : index
    %c0_3 = arith.constant 0 : index
    %5 = vector.load %arg3[%c0, %c0_2, %c0_3] : memref<1x128x128xi8, #tpu.memory_space<vmem>>, vector<1x128x128xi8>
    %6 = vector.shape_cast %5 : vector<1x128x128xi8> to vector<128x128xi8>
    %7 = arith.sitofp %6 : vector<128x128xi8> to vector<128x128xbf16>
    %c0_4 = arith.constant 0 : index
    %c0_5 = arith.constant 0 : index
    %c0_6 = arith.constant 0 : index
    %8 = vector.load %arg5[%c0_4, %c0_5, %c0_6] : memref<1x128x128xbf16, #tpu.memory_space<vmem>>, vector<1x128x128xbf16>
    %9 = vector.shape_cast %8 : vector<1x128x128xbf16> to vector<128x128xbf16>
    %cst = arith.constant dense<0.000000e+00> : vector<128x128xf32>
    %10 = tpu.matmul %7, %9, %cst {dimension_numbers = #tpu.dot_dimension_numbers<[1], [0], [0], [1], [0, 0, 1, 1], [], []>} : vector<128x128xbf16>, vector<128x128xbf16>, vector<128x128xf32> -> vector<128x128xf32>
    %c0_7 = arith.constant 0 : index
    %c0_8 = arith.constant 0 : index
    %11 = vector.load %arg8[%c0_7, %c0_8] : memref<128x128xf32, #tpu.memory_space<vmem>>, vector<128x128xf32>
    %c0_9 = arith.constant 0 : index
    %c0_10 = arith.constant 0 : index
    %c0_11 = arith.constant 0 : index
    %12 = vector.load %arg4[%c0_9, %c0_10, %c0_11] : memref<1x128x1xf32, #tpu.memory_space<vmem>>, vector<1x128x1xf32>
    %13 = vector.shape_cast %12 : vector<1x128x1xf32> to vector<128x1xf32>
    %14 = vector.broadcast %13 : vector<128x1xf32> to vector<128x128xf32>
    %15 = arith.mulf %14, %10 : vector<128x128xf32>
    %16 = arith.addf %11, %15 : vector<128x128xf32>
    %c0_12 = arith.constant 0 : index
    %c0_13 = arith.constant 0 : index
    %17 = vector.load %arg8[%c0_12, %c0_13] : memref<128x128xf32, #tpu.memory_space<vmem>>, vector<128x128xf32>
    tpu.vector_store %arg8[%c0_12, %c0_13], %16 {strides = array<i32>} : memref<128x128xf32, #tpu.memory_space<vmem>>, vector<128x128xf32>,
    %c3_i32 = arith.constant 3 : i32
    %18 = arith.cmpi eq, %arg1, %c3_i32 : i32
    %c2_i32 = arith.constant 2 : i32
    %19 = arith.cmpi eq, %arg2, %c2_i32 : i32
    %20 = arith.andi %18, %19 : i1
    %21 = arith.extui %20 : i1 to i32
    %c0_i32_14 = arith.constant 0 : i32
    %22 = arith.cmpi ne, %21, %c0_i32_14 : i32
    scf.if %22 {
      %c0_15 = arith.constant 0 : index
      %c0_16 = arith.constant 0 : index
      %23 = vector.load %arg8[%c0_15, %c0_16] : memref<128x128xf32, #tpu.memory_space<vmem>>, vector<128x128xf32>
      %c0_17 = arith.constant 0 : index
      %c0_18 = arith.constant 0 : index
      %24 = vector.load %arg6[%c0_17, %c0_18] : memref<1x128xf32, #tpu.memory_space<vmem>>, vector<1x128xf32>
      %25 = vector.broadcast %24 : vector<1x128xf32> to vector<128x128xf32>
      %26 = arith.addf %23, %25 : vector<128x128xf32>
      %cst_19 = arith.constant 0.000000e+00 : f32
      %27 = vector.broadcast %cst_19 : f32 to vector<128x128xf32>
      %28 = arith.maximumf %26, %27 : vector<128x128xf32>
      %29 = arith.truncf %28 : vector<128x128xf32> to vector<128x128xbf16>
      %c0_20 = arith.constant 0 : index
      %c0_21 = arith.constant 0 : index
      %30 = vector.load %arg7[%c0_20, %c0_21] : memref<128x128xbf16, #tpu.memory_space<vmem>>, vector<128x128xbf16>
      tpu.vector_store %arg7[%c0_20, %c0_21], %29 {strides = array<i32>} : memref<128x128xbf16, #tpu.memory_space<vmem>>, vector<128x128xbf16>,
    } else {
    }
    return
  }
  func.func @transform_0(%arg0: i32, %arg1: i32, %arg2: i32) -> (i32, i32, i32) {
    %c0_i32 = arith.constant 0 : i32
    return %arg1, %arg0, %arg2 : i32, i32, i32
  }
  func.func @transform_1(%arg0: i32, %arg1: i32, %arg2: i32) -> (i32, i32, i32) {
    %c0_i32 = arith.constant 0 : i32
    %c0_i32_0 = arith.constant 0 : i32
    return %arg1, %arg0, %c0_i32 : i32, i32, i32
  }
  func.func @transform_2(%arg0: i32, %arg1: i32, %arg2: i32) -> (i32, i32, i32) {
    %c0_i32 = arith.constant 0 : i32
    %c0_i32_0 = arith.constant 0 : i32
    %c0_i32_1 = arith.constant 0 : i32
    return %c0_i32, %arg2, %c0_i32_0 : i32, i32, i32
  }
  func.func @transform_3(%arg0: i32, %arg1: i32, %arg2: i32) -> (i32, i32) {
    %c0_i32 = arith.constant 0 : i32
    %c0_i32_0 = arith.constant 0 : i32
    %c0_i32_1 = arith.constant 0 : i32
    return %c0_i32, %c0_i32_0 : i32, i32
  }
  func.func @transform_4(%arg0: i32, %arg1: i32, %arg2: i32) -> (i32, i32) {
    %c0_i32 = arith.constant 0 : i32
    %c0_i32_0 = arith.constant 0 : i32
    return %arg0, %c0_i32 : i32, i32
  }
}

module attributes {stable_mosaic.version = 11 : i64} {
  func.func @_xw_kernel(%arg0: i32, %arg1: i32, %arg2: memref<128x128xbf16, #tpu.memory_space<vmem>>, %arg3: memref<1x128x128xbf16, #tpu.memory_space<vmem>>, %arg4: memref<1x128x128xbf16, #tpu.memory_space<vmem>>) attributes {dimension_semantics = [#tpu.dimension_semantics<parallel>, #tpu.dimension_semantics<parallel>], iteration_bounds = array<i64: 4, 3>, scalar_prefetch = 0 : i64, scratch_operands = 0 : i64, tpu.core_type = #tpu.core_type<tc>, window_params = [{transform_indices = @transform_0, window_bounds = array<i64: 128, 128>}, {transform_indices = @transform_1, window_bounds = array<i64: 1, 128, 128>}, {transform_indices = @transform_2, window_bounds = array<i64: 1, 128, 128>}]} {
    %c0 = arith.constant 0 : index
    %c0_0 = arith.constant 0 : index
    %0 = vector.load %arg2[%c0, %c0_0] : memref<128x128xbf16, #tpu.memory_space<vmem>>, vector<128x128xbf16>
    %c0_1 = arith.constant 0 : index
    %c0_2 = arith.constant 0 : index
    %c0_3 = arith.constant 0 : index
    %1 = vector.load %arg3[%c0_1, %c0_2, %c0_3] : memref<1x128x128xbf16, #tpu.memory_space<vmem>>, vector<1x128x128xbf16>
    %2 = vector.shape_cast %1 : vector<1x128x128xbf16> to vector<128x128xbf16>
    %cst = arith.constant dense<0.000000e+00> : vector<128x128xf32>
    %3 = tpu.matmul %0, %2, %cst {dimension_numbers = #tpu.dot_dimension_numbers<[1], [0], [0], [1], [0, 0, 1, 1], [], []>} : vector<128x128xbf16>, vector<128x128xbf16>, vector<128x128xf32> -> vector<128x128xf32>
    %4 = arith.truncf %3 : vector<128x128xf32> to vector<128x128xbf16>
    %c0_4 = arith.constant 0 : index
    %c0_5 = arith.constant 0 : index
    %c0_6 = arith.constant 0 : index
    %5 = vector.load %arg4[%c0_4, %c0_5, %c0_6] : memref<1x128x128xbf16, #tpu.memory_space<vmem>>, vector<1x128x128xbf16>
    %6 = vector.shape_cast %5 : vector<1x128x128xbf16> to vector<128x128xbf16>
    %7 = vector.shape_cast %4 : vector<128x128xbf16> to vector<1x128x128xbf16>
    tpu.vector_store %arg4[%c0_4, %c0_5, %c0_6], %7 {strides = array<i32>} : memref<1x128x128xbf16, #tpu.memory_space<vmem>>, vector<1x128x128xbf16>,
    return
  }
  func.func @transform_0(%arg0: i32, %arg1: i32) -> (i32, i32) {
    %c0_i32 = arith.constant 0 : i32
    %c0_i32_0 = arith.constant 0 : i32
    return %arg1, %c0_i32 : i32, i32
  }
  func.func @transform_1(%arg0: i32, %arg1: i32) -> (i32, i32, i32) {
    %c0_i32 = arith.constant 0 : i32
    %c0_i32_0 = arith.constant 0 : i32
    %c0_i32_1 = arith.constant 0 : i32
    return %arg0, %c0_i32, %c0_i32_0 : i32, i32, i32
  }
  func.func @transform_2(%arg0: i32, %arg1: i32) -> (i32, i32, i32) {
    %c0_i32 = arith.constant 0 : i32
    %c0_i32_0 = arith.constant 0 : i32
    return %arg0, %arg1, %c0_i32 : i32, i32, i32
  }
}

module attributes {stable_mosaic.version = 11 : i64} {
  func.func @_agg_kernel(%arg0: i32, %arg1: i32, %arg2: i32, %arg3: memref<1x128x128xi8, #tpu.memory_space<vmem>>, %arg4: memref<1x128x1xf32, #tpu.memory_space<vmem>>, %arg5: memref<1x128x128xbf16, #tpu.memory_space<vmem>>, %arg6: memref<1x128xf32, #tpu.memory_space<vmem>>, %arg7: memref<128x128xbf16, #tpu.memory_space<vmem>>, %arg8: memref<128x128xf32, #tpu.memory_space<vmem>>) attributes {dimension_semantics = [#tpu.dimension_semantics<parallel>, #tpu.dimension_semantics<arbitrary>, #tpu.dimension_semantics<arbitrary>], iteration_bounds = array<i64: 3, 4, 3>, scalar_prefetch = 0 : i64, scratch_operands = 1 : i64, tpu.core_type = #tpu.core_type<tc>, window_params = [{transform_indices = @transform_0, window_bounds = array<i64: 1, 128, 128>}, {transform_indices = @transform_1, window_bounds = array<i64: 1, 128, 1>}, {transform_indices = @transform_2, window_bounds = array<i64: 1, 128, 128>}, {pipeline_mode = #tpu.pipeline_mode<synchronous>, transform_indices = @transform_3, window_bounds = array<i64: 1, 128>}, {transform_indices = @transform_4, window_bounds = array<i64: 128, 128>}]} {
    %c0_i32 = arith.constant 0 : i32
    %0 = arith.cmpi eq, %arg1, %c0_i32 : i32
    %c0_i32_0 = arith.constant 0 : i32
    %1 = arith.cmpi eq, %arg2, %c0_i32_0 : i32
    %2 = arith.andi %0, %1 : i1
    %3 = arith.extui %2 : i1 to i32
    %c0_i32_1 = arith.constant 0 : i32
    %4 = arith.cmpi ne, %3, %c0_i32_1 : i32
    scf.if %4 {
      %cst_15 = arith.constant 0.000000e+00 : f32
      %23 = vector.broadcast %cst_15 : f32 to vector<128x128xf32>
      %c0_16 = arith.constant 0 : index
      %c0_17 = arith.constant 0 : index
      %24 = vector.load %arg8[%c0_16, %c0_17] : memref<128x128xf32, #tpu.memory_space<vmem>>, vector<128x128xf32>
      tpu.vector_store %arg8[%c0_16, %c0_17], %23 {strides = array<i32>} : memref<128x128xf32, #tpu.memory_space<vmem>>, vector<128x128xf32>,
    } else {
    }
    %c0 = arith.constant 0 : index
    %c0_2 = arith.constant 0 : index
    %c0_3 = arith.constant 0 : index
    %5 = vector.load %arg3[%c0, %c0_2, %c0_3] : memref<1x128x128xi8, #tpu.memory_space<vmem>>, vector<1x128x128xi8>
    %6 = vector.shape_cast %5 : vector<1x128x128xi8> to vector<128x128xi8>
    %7 = arith.sitofp %6 : vector<128x128xi8> to vector<128x128xbf16>
    %c0_4 = arith.constant 0 : index
    %c0_5 = arith.constant 0 : index
    %c0_6 = arith.constant 0 : index
    %8 = vector.load %arg5[%c0_4, %c0_5, %c0_6] : memref<1x128x128xbf16, #tpu.memory_space<vmem>>, vector<1x128x128xbf16>
    %9 = vector.shape_cast %8 : vector<1x128x128xbf16> to vector<128x128xbf16>
    %cst = arith.constant dense<0.000000e+00> : vector<128x128xf32>
    %10 = tpu.matmul %7, %9, %cst {dimension_numbers = #tpu.dot_dimension_numbers<[1], [0], [0], [1], [0, 0, 1, 1], [], []>} : vector<128x128xbf16>, vector<128x128xbf16>, vector<128x128xf32> -> vector<128x128xf32>
    %c0_7 = arith.constant 0 : index
    %c0_8 = arith.constant 0 : index
    %11 = vector.load %arg8[%c0_7, %c0_8] : memref<128x128xf32, #tpu.memory_space<vmem>>, vector<128x128xf32>
    %c0_9 = arith.constant 0 : index
    %c0_10 = arith.constant 0 : index
    %c0_11 = arith.constant 0 : index
    %12 = vector.load %arg4[%c0_9, %c0_10, %c0_11] : memref<1x128x1xf32, #tpu.memory_space<vmem>>, vector<1x128x1xf32>
    %13 = vector.shape_cast %12 : vector<1x128x1xf32> to vector<128x1xf32>
    %14 = vector.broadcast %13 : vector<128x1xf32> to vector<128x128xf32>
    %15 = arith.mulf %14, %10 : vector<128x128xf32>
    %16 = arith.addf %11, %15 : vector<128x128xf32>
    %c0_12 = arith.constant 0 : index
    %c0_13 = arith.constant 0 : index
    %17 = vector.load %arg8[%c0_12, %c0_13] : memref<128x128xf32, #tpu.memory_space<vmem>>, vector<128x128xf32>
    tpu.vector_store %arg8[%c0_12, %c0_13], %16 {strides = array<i32>} : memref<128x128xf32, #tpu.memory_space<vmem>>, vector<128x128xf32>,
    %c3_i32 = arith.constant 3 : i32
    %18 = arith.cmpi eq, %arg1, %c3_i32 : i32
    %c2_i32 = arith.constant 2 : i32
    %19 = arith.cmpi eq, %arg2, %c2_i32 : i32
    %20 = arith.andi %18, %19 : i1
    %21 = arith.extui %20 : i1 to i32
    %c0_i32_14 = arith.constant 0 : i32
    %22 = arith.cmpi ne, %21, %c0_i32_14 : i32
    scf.if %22 {
      %c0_15 = arith.constant 0 : index
      %c0_16 = arith.constant 0 : index
      %23 = vector.load %arg8[%c0_15, %c0_16] : memref<128x128xf32, #tpu.memory_space<vmem>>, vector<128x128xf32>
      %c0_17 = arith.constant 0 : index
      %c0_18 = arith.constant 0 : index
      %24 = vector.load %arg6[%c0_17, %c0_18] : memref<1x128xf32, #tpu.memory_space<vmem>>, vector<1x128xf32>
      %25 = vector.broadcast %24 : vector<1x128xf32> to vector<128x128xf32>
      %26 = arith.addf %23, %25 : vector<128x128xf32>
      %cst_19 = arith.constant 0.000000e+00 : f32
      %27 = vector.broadcast %cst_19 : f32 to vector<128x128xf32>
      %28 = arith.maximumf %26, %27 : vector<128x128xf32>
      %29 = arith.truncf %28 : vector<128x128xf32> to vector<128x128xbf16>
      %c0_20 = arith.constant 0 : index
      %c0_21 = arith.constant 0 : index
      %30 = vector.load %arg7[%c0_20, %c0_21] : memref<128x128xbf16, #tpu.memory_space<vmem>>, vector<128x128xbf16>
      tpu.vector_store %arg7[%c0_20, %c0_21], %29 {strides = array<i32>} : memref<128x128xbf16, #tpu.memory_space<vmem>>, vector<128x128xbf16>,
    } else {
    }
    return
  }
  func.func @transform_0(%arg0: i32, %arg1: i32, %arg2: i32) -> (i32, i32, i32) {
    %c0_i32 = arith.constant 0 : i32
    return %arg1, %arg0, %arg2 : i32, i32, i32
  }
  func.func @transform_1(%arg0: i32, %arg1: i32, %arg2: i32) -> (i32, i32, i32) {
    %c0_i32 = arith.constant 0 : i32
    %c0_i32_0 = arith.constant 0 : i32
    return %arg1, %arg0, %c0_i32 : i32, i32, i32
  }
  func.func @transform_2(%arg0: i32, %arg1: i32, %arg2: i32) -> (i32, i32, i32) {
    %c0_i32 = arith.constant 0 : i32
    %c0_i32_0 = arith.constant 0 : i32
    return %arg1, %arg2, %c0_i32 : i32, i32, i32
  }
  func.func @transform_3(%arg0: i32, %arg1: i32, %arg2: i32) -> (i32, i32) {
    %c0_i32 = arith.constant 0 : i32
    %c0_i32_0 = arith.constant 0 : i32
    %c0_i32_1 = arith.constant 0 : i32
    return %c0_i32, %c0_i32_0 : i32, i32
  }
  func.func @transform_4(%arg0: i32, %arg1: i32, %arg2: i32) -> (i32, i32) {
    %c0_i32 = arith.constant 0 : i32
    %c0_i32_0 = arith.constant 0 : i32
    return %arg0, %c0_i32 : i32, i32
  }
}

module attributes {stable_mosaic.version = 11 : i64} {
  func.func @_agg_kernel(%arg0: i32, %arg1: i32, %arg2: i32, %arg3: memref<1x128x128xi8, #tpu.memory_space<vmem>>, %arg4: memref<1x128x1xf32, #tpu.memory_space<vmem>>, %arg5: memref<1x128x128xbf16, #tpu.memory_space<vmem>>, %arg6: memref<1x128xf32, #tpu.memory_space<vmem>>, %arg7: memref<128x128xf32, #tpu.memory_space<vmem>>, %arg8: memref<128x128xf32, #tpu.memory_space<vmem>>) attributes {dimension_semantics = [#tpu.dimension_semantics<parallel>, #tpu.dimension_semantics<arbitrary>, #tpu.dimension_semantics<arbitrary>], iteration_bounds = array<i64: 3, 4, 3>, scalar_prefetch = 0 : i64, scratch_operands = 1 : i64, tpu.core_type = #tpu.core_type<tc>, window_params = [{transform_indices = @transform_0, window_bounds = array<i64: 1, 128, 128>}, {transform_indices = @transform_1, window_bounds = array<i64: 1, 128, 1>}, {transform_indices = @transform_2, window_bounds = array<i64: 1, 128, 128>}, {pipeline_mode = #tpu.pipeline_mode<synchronous>, transform_indices = @transform_3, window_bounds = array<i64: 1, 128>}, {transform_indices = @transform_4, window_bounds = array<i64: 128, 128>}]} {
    %c0_i32 = arith.constant 0 : i32
    %0 = arith.cmpi eq, %arg1, %c0_i32 : i32
    %c0_i32_0 = arith.constant 0 : i32
    %1 = arith.cmpi eq, %arg2, %c0_i32_0 : i32
    %2 = arith.andi %0, %1 : i1
    %3 = arith.extui %2 : i1 to i32
    %c0_i32_1 = arith.constant 0 : i32
    %4 = arith.cmpi ne, %3, %c0_i32_1 : i32
    scf.if %4 {
      %cst_15 = arith.constant 0.000000e+00 : f32
      %23 = vector.broadcast %cst_15 : f32 to vector<128x128xf32>
      %c0_16 = arith.constant 0 : index
      %c0_17 = arith.constant 0 : index
      %24 = vector.load %arg8[%c0_16, %c0_17] : memref<128x128xf32, #tpu.memory_space<vmem>>, vector<128x128xf32>
      tpu.vector_store %arg8[%c0_16, %c0_17], %23 {strides = array<i32>} : memref<128x128xf32, #tpu.memory_space<vmem>>, vector<128x128xf32>,
    } else {
    }
    %c0 = arith.constant 0 : index
    %c0_2 = arith.constant 0 : index
    %c0_3 = arith.constant 0 : index
    %5 = vector.load %arg3[%c0, %c0_2, %c0_3] : memref<1x128x128xi8, #tpu.memory_space<vmem>>, vector<1x128x128xi8>
    %6 = vector.shape_cast %5 : vector<1x128x128xi8> to vector<128x128xi8>
    %7 = arith.sitofp %6 : vector<128x128xi8> to vector<128x128xbf16>
    %c0_4 = arith.constant 0 : index
    %c0_5 = arith.constant 0 : index
    %c0_6 = arith.constant 0 : index
    %8 = vector.load %arg5[%c0_4, %c0_5, %c0_6] : memref<1x128x128xbf16, #tpu.memory_space<vmem>>, vector<1x128x128xbf16>
    %9 = vector.shape_cast %8 : vector<1x128x128xbf16> to vector<128x128xbf16>
    %cst = arith.constant dense<0.000000e+00> : vector<128x128xf32>
    %10 = tpu.matmul %7, %9, %cst {dimension_numbers = #tpu.dot_dimension_numbers<[1], [0], [0], [1], [0, 0, 1, 1], [], []>} : vector<128x128xbf16>, vector<128x128xbf16>, vector<128x128xf32> -> vector<128x128xf32>
    %c0_7 = arith.constant 0 : index
    %c0_8 = arith.constant 0 : index
    %11 = vector.load %arg8[%c0_7, %c0_8] : memref<128x128xf32, #tpu.memory_space<vmem>>, vector<128x128xf32>
    %c0_9 = arith.constant 0 : index
    %c0_10 = arith.constant 0 : index
    %c0_11 = arith.constant 0 : index
    %12 = vector.load %arg4[%c0_9, %c0_10, %c0_11] : memref<1x128x1xf32, #tpu.memory_space<vmem>>, vector<1x128x1xf32>
    %13 = vector.shape_cast %12 : vector<1x128x1xf32> to vector<128x1xf32>
    %14 = vector.broadcast %13 : vector<128x1xf32> to vector<128x128xf32>
    %15 = arith.mulf %14, %10 : vector<128x128xf32>
    %16 = arith.addf %11, %15 : vector<128x128xf32>
    %c0_12 = arith.constant 0 : index
    %c0_13 = arith.constant 0 : index
    %17 = vector.load %arg8[%c0_12, %c0_13] : memref<128x128xf32, #tpu.memory_space<vmem>>, vector<128x128xf32>
    tpu.vector_store %arg8[%c0_12, %c0_13], %16 {strides = array<i32>} : memref<128x128xf32, #tpu.memory_space<vmem>>, vector<128x128xf32>,
    %c3_i32 = arith.constant 3 : i32
    %18 = arith.cmpi eq, %arg1, %c3_i32 : i32
    %c2_i32 = arith.constant 2 : i32
    %19 = arith.cmpi eq, %arg2, %c2_i32 : i32
    %20 = arith.andi %18, %19 : i1
    %21 = arith.extui %20 : i1 to i32
    %c0_i32_14 = arith.constant 0 : i32
    %22 = arith.cmpi ne, %21, %c0_i32_14 : i32
    scf.if %22 {
      %c0_15 = arith.constant 0 : index
      %c0_16 = arith.constant 0 : index
      %23 = vector.load %arg8[%c0_15, %c0_16] : memref<128x128xf32, #tpu.memory_space<vmem>>, vector<128x128xf32>
      %c0_17 = arith.constant 0 : index
      %c0_18 = arith.constant 0 : index
      %24 = vector.load %arg6[%c0_17, %c0_18] : memref<1x128xf32, #tpu.memory_space<vmem>>, vector<1x128xf32>
      %25 = vector.broadcast %24 : vector<1x128xf32> to vector<128x128xf32>
      %26 = arith.addf %23, %25 : vector<128x128xf32>
      %c0_19 = arith.constant 0 : index
      %c0_20 = arith.constant 0 : index
      %27 = vector.load %arg7[%c0_19, %c0_20] : memref<128x128xf32, #tpu.memory_space<vmem>>, vector<128x128xf32>
      tpu.vector_store %arg7[%c0_19, %c0_20], %26 {strides = array<i32>} : memref<128x128xf32, #tpu.memory_space<vmem>>, vector<128x128xf32>,
    } else {
    }
    return
  }
  func.func @transform_0(%arg0: i32, %arg1: i32, %arg2: i32) -> (i32, i32, i32) {
    %c0_i32 = arith.constant 0 : i32
    return %arg1, %arg0, %arg2 : i32, i32, i32
  }
  func.func @transform_1(%arg0: i32, %arg1: i32, %arg2: i32) -> (i32, i32, i32) {
    %c0_i32 = arith.constant 0 : i32
    %c0_i32_0 = arith.constant 0 : i32
    return %arg1, %arg0, %c0_i32 : i32, i32, i32
  }
  func.func @transform_2(%arg0: i32, %arg1: i32, %arg2: i32) -> (i32, i32, i32) {
    %c0_i32 = arith.constant 0 : i32
    %c0_i32_0 = arith.constant 0 : i32
    return %arg1, %arg2, %c0_i32 : i32, i32, i32
  }
  func.func @transform_3(%arg0: i32, %arg1: i32, %arg2: i32) -> (i32, i32) {
    %c0_i32 = arith.constant 0 : i32
    %c0_i32_0 = arith.constant 0 : i32
    %c0_i32_1 = arith.constant 0 : i32
    return %c0_i32, %c0_i32_0 : i32, i32
  }
  func.func @transform_4(%arg0: i32, %arg1: i32, %arg2: i32) -> (i32, i32) {
    %c0_i32 = arith.constant 0 : i32
    %c0_i32_0 = arith.constant 0 : i32
    return %arg0, %c0_i32 : i32, i32
  }
}

</mosaic_0001>

<bundles_post_ra>
// kernel: node_classifier_forward.5
= control target key start
LH: loop header
LB: loop body
LE: loop exit
PB: predicated region body
PF: predicated region fallthrough
CT: control target
= control target key end

     0   :  { %s1500_s0 = inlined_call_operand.vmem [shape: s8[4,384,384], index: 0, kind: input, shape index: {}]   ;;  %s1501_s1 = inlined_call_operand.vmem [shape: f32[4,384,1], index: 1, kind: input, shape index: {}]   ;;  %s1502_s2 = inlined_call_operand.vmem [shape: bf16[1,384,128], index: 2, kind: input, shape index: {}]   ;;  %s1503_s3 = inlined_call_operand.vmem [shape: f32[1,128], index: 3, kind: input, shape index: {}]   ;;  %s1504_s4 = inlined_call_operand.vmem [shape: bf16[384,128], index: 4, kind: output, shape index: {}]  }
   0x1   :  { %1505 = sst [smem:[#allocation4_spill]] %s1500_s0 }
   0x2   :  { %s1300_s15 = smov 0   ;;  %s1302_s16 = smov 0  }
   0x3   :  { %s1304_s17 = smov 0   ;;  %s1306_s18 = smov 0  }
   0x4   :  { %s1308_s19 = smov 0   ;;  %s1310_s20 = smov 0  }
   0x5   :  { %s1312_s21 = smov 0   ;;  %s1314_s22 = smov 0  }
   0x6   :  { %s1316_s23 = smov 0  }
   0x7 LB: > { %s26_s24 = sadd.s32 1, %s1259_s20  ;;  %s29_s25 = sadd.s32 1, %s1263_s21  ;;  %s1271_s23 = sphi %s1316_s23, %s14_s23   ;;  %s1267_s22 = sphi %s1314_s22, %s1516_s22   ;;  %s1263_s21 = sphi %s1312_s21, %s1515_s21   ;;  %s1259_s20 = sphi %s1310_s20, %s1514_s20   ;;  %s1255_s19 = sphi %s1308_s19, %s1513_s19   ;;  %s1251_s18 = sphi %s1306_s18, %s1512_s18   ;;  %s1247_s17 = sphi %s1304_s17, %s1511_s17   ;;  %s1243_s16 = sphi %s1302_s16, %s1510_s16   ;;  %s1239_s15 = sphi %s1300_s15, %s1509_s15  }
   0x8   : > { %p27_p0 = scmp.ge.s32.totalorder %s26_s24, 3  ;;  %p51_p1 = scmp.ne.s32.totalorder %s1243_s16, %s1239_s15 }
   0x9   : > { %p52_p2 = scmp.eq.s32.totalorder %s1271_s23, 0  ;;  %s33_s26 = sadd.s32 1, %s1267_s22 }
   0xa   : > { %s1518_s25 = smov (!%p27_p0, %s29_s25), %s1263_s21  ;;  %s1524_s24 = smov (%p27_p0, %s26_s24), 0 }
   0xb   : > { %p31_p3 = scmp.ge.s32.totalorder %s1518_s25, 4  ;;  %p1352_p4 = por %p52_p2, %p51_p1 }
   0xc   : > { %s40_s29 = ssub.s32 %s1259_s20, %s1524_s24  ;;  %s44_s7 = sadd.s32 1, %s1243_s16 }
   0xd   : > { %s1520_s25 = smov (%p31_p3, %s1518_s25), 0  ;;  %s1522_s26 = smov (!%p31_p3, %s33_s26), %s1267_s22 }
   0xe   : > { %p35_p5 = scmp.ge.s32.totalorder %s1522_s26, 3  ;;  %s37_s28 = ssub.s32 %s1263_s21, %s1520_s25 }
   0xf   : > { %p947_p7 = scmp.ge.s32.totalorder %s1271_s23, 36 }
  0x10   : > { %s1526_s26 = smov (%p35_p5, %s1522_s26), 0 }
  0x11   : > { %s38_s30 = ssub.s32 %s1267_s22, %s1526_s26 }
  0x12   : > { %s39_s5 = sor.u32 %s38_s30, %s37_s28  ;;  %181 = sbr.rel (%p947_p7) target bundleno = 35 (0x23), region = 20 }
  0x13   : > { %s41_s6 = sor.u32 %s40_s29, %s39_s5 }
  0x14   : > { %p42_p6 = scmp.eq.s32.totalorder %s41_s6, 0 }
  0x16   : > { %s1371_s8 = scalar_select %p42_p6, %s1243_s16, %s44_s7  }
  0x17   : > { %184 = sbr.rel (!%p1352_p4) target bundleno = 35 (0x23), region = 24  ;;  %s186_s9 = sand.u32 (%p1352_p4), 1, %s1243_s16  }
  0x18   : > { %s1114_s10 = smul.u32 (%p1352_p4), 12, %s1267_s22  ;;  %s948_s11 = sshll.u32 (%p1352_p4), %s186_s9, 5 }
  0x19   : > { %s1115_s12 = smul.u32 (%p1352_p4), 36, %s1263_s21  ;;  %s1507_s0 = sld [smem:[#allocation4_spill]] (%p1352_p4) }
  0x1a   : > { %s191_s13 = sadd.s32 (%p1352_p4), %s1259_s20, %s1114_s10  ;;  %s188_s27 = scalar_lea.vmem (%p1352_p4), [#allocation3], %s948_s11 }
  0x1b   : > { %s193_s14 = sadd.s32 (%p1352_p4), %s1115_s12, %s191_s13 }
  0x1c   : > { %s951_s28 = sshll.u32 %s193_s14, 3 }
  0x1f   : > { %s195_s5 = scalar_lea.vmem %s1507_s0, %s951_s28 }
  0x20   : > { %v230_v0 = vld [vmem:[%s195_s5] sm:$0xff]  ;;  %v232_v1 = vld [vmem:[%s195_s5 + $0x18] sm:$0xff]  ;;  %v234_v2 = vld [vmem:[%s195_s5 + $0x30] sm:$0xff] }
  0x21   : > { %231 = vst [vmem:[%s188_s27] sm:$0xff] %v230_v0  ;;  %233 = vst [vmem:[%s188_s27 + $0x8] sm:$0xff] %v232_v1  ;;  %v236_v3 = vld [vmem:[%s195_s5 + $0x48] sm:$0xff] }
  0x22   : > { %235 = vst [vmem:[%s188_s27 + $0x10] sm:$0xff] %v234_v2  ;;  %237 = vst [vmem:[%s188_s27 + $0x18] sm:$0xff] %v236_v3 }
  0x23 PF: > { %p952_p8 = scmp.ge.s32.totalorder %s1271_s23, 1  ;;  %p264_p9 = scmp.lt.s32.totalorder %s1271_s23, 37 }
  0x25   : > { %p265_p10 = pnand %p952_p8, %p264_p9 }
  0x26   : > { %s271_s6 = sand.u32 (!%p265_p10), 1, %s1239_s15   ;;  %s954_s7 = sshll.u32 (!%p265_p10), %s1255_s19, 4 }
  0x27   : > { %268 = sbr.rel (%p265_p10) target bundleno = 327 (0x147), region = 70  ;;  %s953_s9 = sshll.u32 (!%p265_p10), %s271_s6, 5 }
  0x28   : > { %p312_p11 = scmp.lt.s32.totalorder (!%p265_p10), %s1251_s18, 3  ;;  %p314_p12 = scmp.lt.s32.totalorder (!%p265_p10), %s954_s7, 47 }
  0x29   : > { %s956_s12 = sshll.u32 (!%p265_p10), %s1247_s17, 4  ;;  %p334_p0 = scmp.eq.s32.totalorder (!%p265_p10), %s1251_s18, 0 }
  0x2a   : > { %p322_p13 = scmp.lt.s32.totalorder (!%p265_p10), %s956_s12, 47  ;;  %p335_p1 = scmp.eq.s32.totalorder (!%p265_p10), %s1247_s17, 0 }
  0x2c   : > { %s313_s10 = scalar_select %p312_p11, %s1251_s18, 3 }
  0x2d   : > { %s1528_s7 = smov (!%p314_p12, %s954_s7), 47  ;;  %s1530_s12 = smov (!%p322_p13, %s956_s12), 47 }
  0x2e   : > { %s1116_s11 = smul.u32 48, %s313_s10  ;;  %s959_s13 = sshll.u32 %s1528_s7, 2 }
  0x2f   : > { %s1393_s30 = scalar_lea.vmem %s1504_s4, %s959_s13  ;;  %p336_p2 = pnand %p335_p1, %p334_p0 }
  0x30   : > { %s317_s14 = sadd.s32 %s1116_s11, %s1528_s7  ;;  %s957_s6 = sshll.u32 %s1530_s12, 2 }
  0x31   : > { %s955_s5 = sshll.u32 %s317_s14, 3  ;;  %s1405_s7 = scalar_lea.vmem %s1502_s2, %s957_s6 }
  0x32   : > { %s1399_s19 = scalar_lea.vmem %s1501_s1, %s955_s5  ;;  %s1407_s11 = scalar_lea.vmem [#allocation3], %s953_s9 }
  0x33   : > { %339 = sbr.rel (%p336_p2) target bundleno = 65 (0x41), region = 78 }
  0x38   : > { %v1273_v4 = vmov 0.0  }
  0x39   : > { %340 = vst [vmem:[#allocation2 + $0x30] sm:$0xff] %v1273_v4  ;;  %341 = vst [vmem:[#allocation2] sm:$0xff] %v1273_v4 }
  0x3a   : > { %342 = vst [vmem:[#allocation2 + $0x58] sm:$0xff] %v1273_v4  ;;  %343 = vst [vmem:[#allocation2 + $0x18] sm:$0xff] %v1273_v4 }
  0x3b   : > { %344 = vst [vmem:[#allocation2 + $0x50] sm:$0xff] %v1273_v4  ;;  %345 = vst [vmem:[#allocation2 + $0x68] sm:$0xff] %v1273_v4 }
  0x3c   : > { %346 = vst [vmem:[#allocation2 + $0x8] sm:$0xff] %v1273_v4  ;;  %347 = vst [vmem:[#allocation2 + $0x48] sm:$0xff] %v1273_v4 }
  0x3d   : > { %348 = vst [vmem:[#allocation2 + $0x40] sm:$0xff] %v1273_v4  ;;  %349 = vst [vmem:[#allocation2 + $0x20] sm:$0xff] %v1273_v4 }
  0x3e   : > { %350 = vst [vmem:[#allocation2 + $0x10] sm:$0xff] %v1273_v4  ;;  %351 = vst [vmem:[#allocation2 + $0x38] sm:$0xff] %v1273_v4 }
  0x3f   : > { %352 = vst [vmem:[#allocation2 + $0x60] sm:$0xff] %v1273_v4  ;;  %353 = vst [vmem:[#allocation2 + $0x70] sm:$0xff] %v1273_v4 }
  0x40   : > { %354 = vst [vmem:[#allocation2 + $0x78] sm:$0xff] %v1273_v4  ;;  %355 = vst [vmem:[#allocation2 + $0x28] sm:$0xff] %v1273_v4 }
  0x41 PF: > { %v1193_v5 = vld [vmem:[%s1405_s7 + $0x38] sm:$0xff]   ;;  %v1194_v6 = vld [vmem:[%s1405_s7 + $0x30] sm:$0xff]   ;;  %v1274_v7 = vmov 0   ;;  %v1195_v8 = vld [vmem:[%s1405_s7 + $0x28] sm:$0xff]   ;;  %p689_p3 = scmp.eq.s32.totalorder %s1251_s18, 3  ;;  %p690_p4 = scmp.eq.s32.totalorder %s1247_s17, 2 }
  0x42   : > { %1192 = vset.pattern.permute.xlu1 %v1274_v7  ;;  %1191 = vset.pattern.permute.xlu0 %v1274_v7  ;;  %v1196_v9 = vld [vmem:[%s1405_s7 + $0x20] sm:$0xff]   ;;  %v1417_v11 = vld [vmem:[%s1407_s11 + $0x10] sm:$0xff]  ;;  %v548_v16 = vld [vmem:[%s1399_s19 + $0x18] sm:$0xff] }
  0x43   : > { %1066 = vmatprep.subr.bf16.mxu0 %v1193_v5  ;;  %1098 = vmatprep.subr.bf16.mxu1 %v1193_v5  ;;  %v1414_v10 = vld [vmem:[%s1407_s11] sm:$0xff]  ;;  %v364_v13 = vunpack.c.l.s8.bf16 %v1417_v11  ;;  %v547_v14 = vld [vmem:[%s1399_s19 + $0x10] sm:$0xff]  ;;  %v546_v17 = vld [vmem:[%s1399_s19 + $0x8] sm:$0xff]  ;;  %v365_v33 = vunpack.c.h.s8.bf16 %v1417_v11  ;;  %p1447_p5 = pnand %p690_p4, %p689_p3 }
  0x44   : > { %1067 = vmatpush3.bf16.msra.mxu0 %v1193_v5  ;;  %1106 = vmatpush3.bf16.msra.mxu1 %v1193_v5  ;;  %v360_v12 = vunpack.c.l.s8.bf16 %v1414_v10  ;;  %v545_v15 = vld [vmem:[%s1399_s19] sm:$0xff]  ;;  %v1197_v18 = vld [vmem:[%s1405_s7 + $0x18] sm:$0xff]   ;;  %v550_v19 = vld [vmem:[%s1399_s19 + $0x28] sm:$0xff]  ;;  %v361_v32 = vunpack.c.h.s8.bf16 %v1414_v10 }
  0x45   : > { %1068 = vmatprep.subr.bf16.mxu0 %v1194_v6  ;;  %1099 = vmatprep.subr.bf16.mxu1 %v1194_v6  ;;  %v549_v20 = vld [vmem:[%s1399_s19 + $0x20] sm:$0xff]  ;;  %v1198_v21 = vld [vmem:[%s1405_s7 + $0x10] sm:$0xff]   ;;  %v552_v22 = vld [vmem:[%s1399_s19 + $0x38] sm:$0xff] }
  0x46   : > { %573 = vperm.xlu1 %1192, %v547_v14   ;;  %563 = vperm.xlu0 %1191, %v545_v15   ;;  %v551_v23 = vld [vmem:[%s1399_s19 + $0x30] sm:$0xff]  ;;  %v1199_v24 = vld [vmem:[%s1405_s7 + $0x8] sm:$0xff]   ;;  %v553_v26 = vld [vmem:[%s1399_s19 + $0x40] sm:$0xff] }
  0x47   : > { %1082 = vmatprep.mubr.bf16.mxu0 %v360_v12  ;;  %1090 = vmatprep.mubr.bf16.mxu1 %v364_v13  ;;  %v554_v25 = vld [vmem:[%s1399_s19 + $0x48] sm:$0xff]  ;;  %v1200_v27 = vld [vmem:[%s1405_s7] sm:$0xff]   ;;  %v556_v28 = vld [vmem:[%s1399_s19 + $0x58] sm:$0xff] }
  0x48   : > { %1069 = vmatpush3.bf16.msra.mxu0 %v1194_v6  ;;  %1107 = vmatpush3.bf16.msra.mxu1 %v1194_v6  ;;  %v555_v29 = vld [vmem:[%s1399_s19 + $0x50] sm:$0xff]  ;;  %v357_v30 = vld [vmem:[%s1407_s11 + $0x8] sm:$0xff]  ;;  %v359_v31 = vld [vmem:[%s1407_s11 + $0x18] sm:$0xff] }
  0x49   : > { %1070 = vmatprep.subr.bf16.mxu0 %v1195_v8  ;;  %1100 = vmatprep.subr.bf16.mxu1 %v1195_v8  ;;  %v362_v34 = vunpack.c.l.s8.bf16 %v357_v30  ;;  %v366_v35 = vunpack.c.l.s8.bf16 %v359_v31  ;;  %v558_v36 = vld [vmem:[%s1399_s19 + $0x68] sm:$0xff]  ;;  %v557_v37 = vld [vmem:[%s1399_s19 + $0x60] sm:$0xff]  ;;  %v560_v38 = vld [vmem:[%s1399_s19 + $0x78] sm:$0xff]  ;;  %v363_v40 = vunpack.c.h.s8.bf16 %v357_v30  ;;  %v367_v41 = vunpack.c.h.s8.bf16 %v359_v31 }
  0x4a   : > { %578 = vperm.xlu1 %1192, %v548_v16   ;;  %568 = vperm.xlu0 %1191, %v546_v17   ;;  %v559_v39 = vld [vmem:[%s1399_s19 + $0x70] sm:$0xff]  ;;  %v531_v55 = vld [vmem:[#allocation2 + $0x58] sm:$0xff]  ;;  %v537_v0 = vld [vmem:[#allocation2 + $0x40] sm:$0xff] }
  0x4b   : > { %v539_v57 = vld [vmem:[#allocation2 + $0x10] sm:$0xff]  ;;  %v532_v6 = vld [vmem:[#allocation2 + $0x18] sm:$0xff]  ;;  %v530_v15 = vld [vmem:[#allocation2] sm:$0xff] }
  0x4c   : > { %1071 = vmatpush3.bf16.msra.mxu0 %v1195_v8  ;;  %1108 = vmatpush3.bf16.msra.mxu1 %v1195_v8  ;;  %v529_v62 = vld [vmem:[#allocation2 + $0x30] sm:$0xff]  ;;  %v540_v8 = vld [vmem:[#allocation2 + $0x38] sm:$0xff]  ;;  %v538_v17 = vld [vmem:[#allocation2 + $0x20] sm:$0xff] }
  0x4d   : > { %1072 = vmatprep.subr.bf16.mxu0 %v1196_v9  ;;  %1101 = vmatprep.subr.bf16.mxu1 %v1196_v9 }
  0x4e   : > { %588 = vperm.xlu1 %1192, %v550_v19   ;;  %583 = vperm.xlu0 %1191, %v549_v20  }
  0x50   : > { %1073 = vmatpush3.bf16.msra.mxu0 %v1196_v9  ;;  %1109 = vmatpush3.bf16.msra.mxu1 %v1196_v9 }
  0x51   : > { %1074 = vmatprep.subr.bf16.mxu0 %v1197_v18  ;;  %1102 = vmatprep.subr.bf16.mxu1 %v1197_v18 }
  0x52   : > { %598 = vperm.xlu1 %1192, %v552_v22   ;;  %593 = vperm.xlu0 %1191, %v551_v23  }
  0x54   : > { %1075 = vmatpush3.bf16.msra.mxu0 %v1197_v18  ;;  %1110 = vmatpush3.bf16.msra.mxu1 %v1197_v18 }
  0x55   : > { %1076 = vmatprep.subr.bf16.mxu0 %v1198_v21  ;;  %1103 = vmatprep.subr.bf16.mxu1 %v1198_v21 }
  0x56   : > { %608 = vperm.xlu1 %1192, %v554_v25   ;;  %603 = vperm.xlu0 %1191, %v553_v26   ;;  %v543_v26 = vld [vmem:[#allocation2 + $0x78] sm:$0xff] }
  0x58   : > { %1077 = vmatpush3.bf16.msra.mxu0 %v1198_v21  ;;  %1111 = vmatpush3.bf16.msra.mxu1 %v1198_v21 }
  0x59   : > { %1078 = vmatprep.subr.bf16.mxu0 %v1199_v24  ;;  %1104 = vmatprep.subr.bf16.mxu1 %v1199_v24 }
  0x5a   : > { %618 = vperm.xlu1 %1192, %v556_v28   ;;  %613 = vperm.xlu0 %1191, %v555_v29  }
  0x5c   : > { %1079 = vmatpush3.bf16.msra.mxu0 %v1199_v24  ;;  %1112 = vmatpush3.bf16.msra.mxu1 %v1199_v24  ;;  %v535_v24 = vld [vmem:[#allocation2 + $0x8] sm:$0xff] }
  0x5d   : > { %1080 = vmatprep.subr.bf16.mxu0 %v1200_v27  ;;  %1105 = vmatprep.subr.bf16.mxu1 %v1200_v27 }
  0x5e   : > { %628 = vperm.xlu1 %1192, %v558_v36   ;;  %623 = vperm.xlu0 %1191, %v557_v37  }
  0x60   : > { %1081 = vmatpush3.bf16.msra.mxu0 %v1200_v27  ;;  %1113 = vmatpush3.bf16.msra.mxu1 %v1200_v27 }
  0x62   : > { %638 = vperm.xlu1 %1192, %v560_v38   ;;  %633 = vperm.xlu0 %1191, %v559_v39  }
  0x63   : > { %1083 = vmatmul.mubr.bf16.vlgmr.msra.gmra.mxu0 %v361_v32  ;;  %1091 = vmatmul.mubr.bf16.vlgmr.msra.gmra.mxu1 %v365_v33  ;;  %v533_v32 = vld [vmem:[#allocation2 + $0x50] sm:$0xff] }
  0x64   : > { %1086 = vmatprep.mubr.bf16.mxu0 %v362_v34  ;;  %1094 = vmatprep.mubr.bf16.mxu1 %v366_v35  ;;  %v541_v34 = vld [vmem:[#allocation2 + $0x60] sm:$0xff] }
  0x6b   : > { %1087 = vmatmul.mubr.bf16.gmra.mxu0 %v363_v40  ;;  %1095 = vmatmul.mubr.bf16.gmra.mxu1 %v367_v41  ;;  %v536_v41 = vld [vmem:[#allocation2 + $0x48] sm:$0xff] }
  0xc1   : > { %v564_v42 = vpop.permute.xlu0 %563  ;;  %v574_v43 = vpop.permute.xlu1 %573 }
  0xc5   : > { %v569_v44 = vpop.permute.xlu0 %568  ;;  %v579_v45 = vpop.permute.xlu1 %578 }
  0xc9   : > { %v1451_v46 = vpop.permute.xlu0 %583  ;;  %v1453_v47 = vpop.permute.xlu1 %588 }
  0xcd   : > { %v594_v48 = vpop.permute.xlu0 %593  ;;  %v1455_v49 = vpop.permute.xlu1 %598 }
  0xd1   : > { %v604_v50 = vpop.permute.xlu0 %603  ;;  %v609_v51 = vpop.permute.xlu1 %608 }
  0xd5   : > { %v614_v52 = vpop.permute.xlu0 %613  ;;  %v619_v53 = vpop.permute.xlu1 %618 }
  0xd9   : > { %v624_v58 = vpop.permute.xlu0 %623  ;;  %v629_v9 = vpop.permute.xlu1 %628 }
  0xdd   : > { %v634_v18 = vpop.permute.xlu0 %633  ;;  %v639_v35 = vpop.permute.xlu1 %638 }
 0x123   : > { %v1084_v54 = vpop.f32.mrf.mxu0  ;;  %v1092_v56 = vpop.f32.mrf.mxu1 }
 0x124   : > { %v643_v59 = vmul.f32 %v1084_v54, %v574_v43  ;;  %v651_v60 = vmul.f32 %v1092_v56, %v614_v52  ;;  %v544_v43 = vld [vmem:[#allocation2 + $0x28] sm:$0xff]  ;;  %v542_v54 = vld [vmem:[#allocation2 + $0x70] sm:$0xff] }
 0x125   : > { %v466_v61 = vpop.f32.mrf.mxu0  ;;  %v498_v63 = vpop.f32.mrf.mxu1  ;;  %v534_v52 = vld [vmem:[#allocation2 + $0x68] sm:$0xff] }
 0x126   : > { %v659_v1 = vadd.f32 %v643_v59, %v531_v55  ;;  %v667_v2 = vadd.f32 %v651_v60, %v539_v57  ;;  %v641_v3 = vmul.f32 %v564_v42, %v466_v61  ;;  %v649_v4 = vmul.f32 %v604_v50, %v498_v63 }
 0x127   : > { %v1085_v5 = vpop.f32.mrf.mxu0  ;;  %v1093_v7 = vpop.f32.mrf.mxu1 }
 0x128   : > { %675 = vst [vmem:[#allocation2 + $0x58] sm:$0xff] %v659_v1  ;;  %683 = vst [vmem:[#allocation2 + $0x10] sm:$0xff] %v667_v2  ;;  %v657_v10 = vadd.f32 %v641_v3, %v529_v62  ;;  %v665_v11 = vadd.f32 %v649_v4, %v537_v0  ;;  %v644_v12 = vmul.f32 %v1085_v5, %v579_v45 }
 0x129   : > { %v652_v13 = vmul.f32 %v1093_v7, %v619_v53  ;;  %v469_v14 = vpop.f32.mrf.mxu0  ;;  %v501_v16 = vpop.f32.mrf.mxu1 }
 0x12a   : > { %673 = vst [vmem:[#allocation2 + $0x30] sm:$0xff] %v657_v10  ;;  %681 = vst [vmem:[#allocation2 + $0x40] sm:$0xff] %v665_v11  ;;  %v660_v19 = vadd.f32 %v644_v12, %v532_v6  ;;  %v642_v21 = vmul.f32 %v569_v44, %v469_v14  ;;  %v650_v22 = vmul.f32 %v609_v51, %v501_v16 }
 0x12b   : > { %v668_v20 = vadd.f32 %v652_v13, %v540_v8  ;;  %v1088_v23 = vpop.f32.mrf.mxu0  ;;  %v1096_v25 = vpop.f32.mrf.mxu1 }
 0x12c   : > { %676 = vst [vmem:[#allocation2 + $0x18] sm:$0xff] %v660_v19  ;;  %v658_v27 = vadd.f32 %v642_v21, %v530_v15  ;;  %v666_v28 = vadd.f32 %v650_v22, %v538_v17  ;;  %v647_v29 = vmul.f32 %v1088_v23, %v594_v48  ;;  %v655_v30 = vmul.f32 %v1096_v25, %v634_v18 }
 0x12d   : > { %684 = vst [vmem:[#allocation2 + $0x38] sm:$0xff] %v668_v20  ;;  %v482_v31 = vpop.f32.mrf.mxu0  ;;  %v514_v33 = vpop.f32.mrf.mxu1 }
 0x12e   : > { %674 = vst [vmem:[#allocation2] sm:$0xff] %v658_v27  ;;  %682 = vst [vmem:[#allocation2 + $0x20] sm:$0xff] %v666_v28  ;;  %v663_v36 = vadd.f32 %v647_v29, %v535_v24  ;;  %v671_v37 = vadd.f32 %v655_v30, %v543_v26  ;;  %v645_v38 = vmul.f32 %v1451_v46, %v482_v31 }
 0x12f   : > { %v653_v39 = vmul.f32 %v624_v58, %v514_v33  ;;  %v1089_v40 = vpop.f32.mrf.mxu0  ;;  %v1097_v42 = vpop.f32.mrf.mxu1 }
 0x130   : > { %679 = vst [vmem:[#allocation2 + $0x8] sm:$0xff] %v663_v36  ;;  %687 = vst [vmem:[#allocation2 + $0x78] sm:$0xff] %v671_v37  ;;  %v661_v44 = vadd.f32 %v645_v38, %v533_v32  ;;  %v648_v48 = vmul.f32 %v1089_v40, %v1455_v49  ;;  %v656_v50 = vmul.f32 %v1097_v42, %v639_v35 }
 0x131   : > { %v669_v45 = vadd.f32 %v653_v39, %v541_v34  ;;  %v485_v51 = vpop.f32.mrf.mxu0  ;;  %v517_v53 = vpop.f32.mrf.mxu1 }
 0x132   : > { %677 = vst [vmem:[#allocation2 + $0x50] sm:$0xff] %v661_v44  ;;  %v664_v55 = vadd.f32 %v648_v48, %v536_v41  ;;  %v672_v46 = vadd.f32 %v656_v50, %v544_v43  ;;  %v646_v56 = vmul.f32 %v1453_v47, %v485_v51  ;;  %v654_v57 = vmul.f32 %v629_v9, %v517_v53  ;;  %694 = sbr.rel (%p1447_p5) target bundleno = 327 (0x147), region = 82 }
 0x133   : > { %685 = vst [vmem:[#allocation2 + $0x60] sm:$0xff] %v669_v45 }
 0x134   : > { %680 = vst [vmem:[#allocation2 + $0x48] sm:$0xff] %v664_v55  ;;  %688 = vst [vmem:[#allocation2 + $0x28] sm:$0xff] %v672_v46  ;;  %v662_v58 = vadd.f32 %v646_v56, %v534_v52  ;;  %v670_v59 = vadd.f32 %v654_v57, %v542_v54 }
 0x136   : > { %678 = vst [vmem:[#allocation2 + $0x68] sm:$0xff] %v662_v58  ;;  %686 = vst [vmem:[#allocation2 + $0x70] sm:$0xff] %v670_v59 }
 0x137   : > { %v695_v49 = vld [vmem:[#allocation2 + $0x30] sm:$0xff]  ;;  %v696_v60 = vld [vmem:[#allocation2] sm:$0xff]  ;;  %v697_v0 = vld [vmem:[#allocation2 + $0x58] sm:$0xff] }
 0x138   : > { %v968_v61 = vld [vmem:[%s1503_s3] ss:$0 sm:$0xff]  ;;  %v698_v47 = vld [vmem:[#allocation2 + $0x18] sm:$0xff]  ;;  %v701_v6 = vld [vmem:[#allocation2 + $0x8] sm:$0xff] }
 0x139   : > { %v718_v62 = vadd.f32 %v968_v61, %v695_v49  ;;  %v719_v63 = vadd.f32 %v968_v61, %v696_v60  ;;  %v699_v1 = vld [vmem:[#allocation2 + $0x50] sm:$0xff]  ;;  %v720_v2 = vadd.f32 %v968_v61, %v697_v0  ;;  %v721_v3 = vadd.f32 %v968_v61, %v698_v47  ;;  %v703_v12 = vld [vmem:[#allocation2 + $0x40] sm:$0xff]  ;;  %v706_v19 = vld [vmem:[#allocation2 + $0x38] sm:$0xff] }
 0x13a   : > { %v722_v5 = vadd.f32 %v968_v61, %v699_v1  ;;  %v724_v11 = vadd.f32 %v968_v61, %v701_v6  ;;  %v704_v13 = vld [vmem:[#allocation2 + $0x20] sm:$0xff]  ;;  %v705_v14 = vld [vmem:[#allocation2 + $0x10] sm:$0xff]  ;;  %v726_v24 = vadd.f32 %v968_v61, %v703_v12  ;;  %v709_v30 = vld [vmem:[#allocation2 + $0x78] sm:$0xff]  ;;  %v729_v34 = vadd.f32 %v968_v61, %v706_v19 }
 0x13b   : > { %v702_v7 = vld [vmem:[#allocation2 + $0x48] sm:$0xff]  ;;  %v734_v8 = vmax.f32 %v718_v62, 0.0  ;;  %v735_v9 = vmax.f32 %v719_v63, 0.0  ;;  %v736_v15 = vmax.f32 %v720_v2, 0.0  ;;  %v737_v16 = vmax.f32 %v721_v3, 0.0  ;;  %v707_v20 = vld [vmem:[#allocation2 + $0x60] sm:$0xff] }
 0x13c   : > { %v738_v17 = vmax.f32 %v722_v5, 0.0  ;;  %v725_v18 = vadd.f32 %v968_v61, %v702_v7  ;;  %v740_v23 = vmax.f32 %v724_v11, 0.0  ;;  %v727_v28 = vadd.f32 %v968_v61, %v704_v13  ;;  %v710_v31 = vld [vmem:[#allocation2 + $0x28] sm:$0xff] }
 0x13d   : > { %v700_v4 = vld [vmem:[#allocation2 + $0x68] sm:$0xff]  ;;  %v1006_v21 = vpack.c.bf16 %v735_v9, %v734_v8  ;;  %v708_v25 = vld [vmem:[#allocation2 + $0x70] sm:$0xff]  ;;  %v1011_v26 = vpack.c.bf16 %v737_v16, %v736_v15  ;;  %v728_v29 = vadd.f32 %v968_v61, %v705_v14  ;;  %v742_v33 = vmax.f32 %v726_v24, 0.0 }
 0x13e   : > { %v723_v10 = vadd.f32 %v968_v61, %v700_v4  ;;  %v741_v27 = vmax.f32 %v725_v18, 0.0  ;;  %v730_v35 = vadd.f32 %v968_v61, %v707_v20  ;;  %v743_v37 = vmax.f32 %v727_v28, 0.0 }
 0x13f   : > { %1007 = vst [vmem:[%s1393_s30] sm:$0xff] %v1006_v21   ;;  %1043 = vst [vmem:[%s1393_s30 + $0x8] sm:$0xff] %v1011_v26   ;;  %v744_v38 = vmax.f32 %v728_v29, 0.0  ;;  %v731_v39 = vadd.f32 %v968_v61, %v708_v25  ;;  %v745_v40 = vmax.f32 %v729_v34, 0.0  ;;  %v732_v42 = vadd.f32 %v968_v61, %v709_v30 }
 0x140   : > { %v739_v22 = vmax.f32 %v723_v10, 0.0  ;;  %v1021_v36 = vpack.c.bf16 %v741_v27, %v740_v23  ;;  %v746_v41 = vmax.f32 %v730_v35, 0.0  ;;  %v733_v43 = vadd.f32 %v968_v61, %v710_v31 }
 0x141   : > { %v1026_v44 = vpack.c.bf16 %v743_v37, %v742_v33  ;;  %v747_v45 = vmax.f32 %v731_v39, 0.0  ;;  %v1031_v48 = vpack.c.bf16 %v745_v40, %v744_v38  ;;  %v748_v50 = vmax.f32 %v732_v42, 0.0 }
 0x142   : > { %v1016_v32 = vpack.c.bf16 %v739_v22, %v738_v17  ;;  %1045 = vst [vmem:[%s1393_s30 + $0x18] sm:$0xff] %v1021_v36   ;;  %v749_v51 = vmax.f32 %v733_v43, 0.0 }
 0x143   : > { %1046 = vst [vmem:[%s1393_s30 + $0x20] sm:$0xff] %v1026_v44   ;;  %v1036_v52 = vpack.c.bf16 %v747_v45, %v746_v41  ;;  %1047 = vst [vmem:[%s1393_s30 + $0x28] sm:$0xff] %v1031_v48  }
 0x144   : > { %1044 = vst [vmem:[%s1393_s30 + $0x10] sm:$0xff] %v1016_v32   ;;  %v1041_v53 = vpack.c.bf16 %v749_v51, %v748_v50 }
 0x145   : > { %1048 = vst [vmem:[%s1393_s30 + $0x30] sm:$0xff] %v1036_v52  }
 0x146   : > { %1049 = vst [vmem:[%s1393_s30 + $0x38] sm:$0xff] %v1041_v53  }
 0x147 PF: > { %s14_s23 = sadd.s32 1, %s1271_s23   ;;  %s1509_s15 = smov %s1243_s16 }
 0x148   : > { %p11_p6 = scmp.ge.s32.totalorder %s14_s23, 38   ;;  %s1510_s16 = smov %s1371_s8 }
 0x149   : > { %s1511_s17 = smov %s1259_s20  ;;  %s1512_s18 = smov %s1263_s21 }
 0x14a   : > { %s1513_s19 = smov %s1267_s22  ;;  %s1514_s20 = smov %s1524_s24 }
 0x14b   : > { %s1515_s21 = smov %s1520_s25  ;;  %s1516_s22 = smov %s1526_s26 }
 0x14c   :  { %13 = sbr.rel (!%p11_p6) target bundleno = 7 (0x7), region = 123 }

// kernel: node_classifier_forward.6
= control target key start
LH: loop header
LB: loop body
LE: loop exit
PB: predicated region body
PF: predicated region fallthrough
CT: control target
= control target key end

     0   :  { %s876_s9 = smov 0   ;;  %s878_s10 = smov 0   ;;  %s958_s0 = inlined_call_operand.vmem [shape: bf16[384,128], index: 0, kind: input, shape index: {}]   ;;  %s959_s1 = inlined_call_operand.vmem [shape: bf16[4,128,128], index: 1, kind: input, shape index: {}]   ;;  %s960_s2 = inlined_call_operand.vmem [shape: bf16[4,384,128], index: 2, kind: output, shape index: {}]  }
   0x1   :  { %s880_s11 = smov 0   ;;  %s882_s12 = smov 0  }
   0x2   :  { %s884_s13 = smov 0  }
   0x3 LB: > { %s21_s14 = sadd.s32 1, %s851_s11  ;;  %s24_s15 = sadd.s32 1, %s855_s12  ;;  %s859_s13 = sphi %s884_s13, %s12_s13   ;;  %s855_s12 = sphi %s882_s12, %s964_s12   ;;  %s851_s11 = sphi %s880_s11, %s963_s11   ;;  %s847_s10 = sphi %s878_s10, %s962_s10   ;;  %s843_s9 = sphi %s876_s9, %s961_s9  }
   0x4   : > { %p22_p0 = scmp.ge.s32.totalorder %s21_s14, 3  ;;  %p595_p1 = scmp.ge.s32.totalorder %s859_s13, 1 }
   0x5   : > { %p137_p2 = scmp.lt.s32.totalorder %s859_s13, 13 }
   0x6   : > { %s966_s14 = smov (%p22_p0, %s21_s14), 0  ;;  %s968_s15 = smov (!%p22_p0, %s24_s15), %s855_s12 }
   0x7   : > { %p138_p3 = pnand %p595_p1, %p137_p2  ;;  %p26_p4 = scmp.ge.s32.totalorder %s968_s15, 4 }
   0x8   : > { %p174_p5 = scmp.lt.s32.totalorder (!%p138_p3), %s847_s10, 3  ;;  %s596_s16 = sshll.u32 (!%p138_p3), %s843_s9, 4 }
   0x9   : > { %s970_s15 = smov (%p26_p4, %s968_s15), 0  ;;  %141 = sbr.rel (%p138_p3) target bundleno = 260 (0x104), region = 28 }
   0xa   : > { %p169_p6 = scmp.lt.s32.totalorder (!%p138_p3), %s596_s16, 47 }
   0xe   : > { %s972_s10 = smov (!%p174_p5, %s847_s10), 3  ;;  %s974_s16 = smov (!%p169_p6, %s596_s16), 47 }
   0xf   : > { %s636_s17 = sshll.u32 %s972_s10, 6  ;;  %s597_s21 = sshll.u32 %s974_s16, 2 }
  0x10   : > { %s914_s20 = scalar_lea.vmem %s959_s1, %s636_s17  ;;  %s923_s24 = scalar_lea.vmem %s958_s0, %s597_s21 }
  0x11   : > { %v805_v0 = vld [vmem:[%s914_s20 + $0x38] sm:$0xff]   ;;  %v806_v1 = vld [vmem:[%s914_s20 + $0x30] sm:$0xff]   ;;  %v807_v2 = vld [vmem:[%s914_s20 + $0x28] sm:$0xff]   ;;  %s764_s25 = smul.u32 48, %s972_s10 }
  0x12   : > { %716 = vmatprep.subr.bf16.mxu0 %v805_v0  ;;  %748 = vmatprep.subr.bf16.mxu1 %v805_v0  ;;  %v808_v3 = vld [vmem:[%s914_s20 + $0x20] sm:$0xff]   ;;  %v809_v6 = vld [vmem:[%s914_s20 + $0x18] sm:$0xff]   ;;  %v810_v7 = vld [vmem:[%s914_s20 + $0x10] sm:$0xff]  }
  0x13   : > { %717 = vmatpush3.bf16.msra.mxu0 %v805_v0  ;;  %756 = vmatpush3.bf16.msra.mxu1 %v805_v0  ;;  %v813_v4 = vld [vmem:[%s923_s24] sm:$0xff]   ;;  %v811_v8 = vld [vmem:[%s914_s20 + $0x8] sm:$0xff]   ;;  %v817_v12 = vld [vmem:[%s923_s24 + $0x10] sm:$0xff]   ;;  %s185_s26 = sadd.s32 %s764_s25, %s974_s16 }
  0x14   : > { %718 = vmatprep.subr.bf16.mxu0 %v806_v1  ;;  %749 = vmatprep.subr.bf16.mxu1 %v806_v1  ;;  %v814_v5 = vld [vmem:[%s923_s24 + $0x20] sm:$0xff]   ;;  %v815_v10 = vld [vmem:[%s923_s24 + $0x8] sm:$0xff]   ;;  %v818_v13 = vld [vmem:[%s923_s24 + $0x30] sm:$0xff]   ;;  %s601_s27 = sshll.u32 %s185_s26, 2 }
  0x15   : > { %732 = vmatprep.mubr.bf16.mxu0 %v813_v4  ;;  %740 = vmatprep.mubr.bf16.mxu1 %v814_v5  ;;  %v812_v9 = vld [vmem:[%s914_s20] sm:$0xff]   ;;  %v816_v11 = vld [vmem:[%s923_s24 + $0x28] sm:$0xff]   ;;  %v819_v14 = vld [vmem:[%s923_s24 + $0x18] sm:$0xff]   ;;  %s187_s30 = scalar_lea.vmem %s960_s2, %s601_s27 }
  0x16   : > { %v820_v15 = vld [vmem:[%s923_s24 + $0x38] sm:$0xff]  }
  0x17   : > { %719 = vmatpush3.bf16.msra.mxu0 %v806_v1  ;;  %757 = vmatpush3.bf16.msra.mxu1 %v806_v1 }
  0x18   : > { %720 = vmatprep.subr.bf16.mxu0 %v807_v2  ;;  %750 = vmatprep.subr.bf16.mxu1 %v807_v2 }
  0x1b   : > { %721 = vmatpush3.bf16.msra.mxu0 %v807_v2  ;;  %758 = vmatpush3.bf16.msra.mxu1 %v807_v2 }
  0x1c   : > { %722 = vmatprep.subr.bf16.mxu0 %v808_v3  ;;  %751 = vmatprep.subr.bf16.mxu1 %v808_v3 }
  0x1f   : > { %723 = vmatpush3.bf16.msra.mxu0 %v808_v3  ;;  %759 = vmatpush3.bf16.msra.mxu1 %v808_v3 }
  0x20   : > { %724 = vmatprep.subr.bf16.mxu0 %v809_v6  ;;  %752 = vmatprep.subr.bf16.mxu1 %v809_v6 }
  0x23   : > { %725 = vmatpush3.bf16.msra.mxu0 %v809_v6  ;;  %760 = vmatpush3.bf16.msra.mxu1 %v809_v6 }
  0x24   : > { %726 = vmatprep.subr.bf16.mxu0 %v810_v7  ;;  %753 = vmatprep.subr.bf16.mxu1 %v810_v7 }
  0x27   : > { %727 = vmatpush3.bf16.msra.mxu0 %v810_v7  ;;  %761 = vmatpush3.bf16.msra.mxu1 %v810_v7 }
  0x28   : > { %728 = vmatprep.subr.bf16.mxu0 %v811_v8  ;;  %754 = vmatprep.subr.bf16.mxu1 %v811_v8 }
  0x2b   : > { %729 = vmatpush3.bf16.msra.mxu0 %v811_v8  ;;  %762 = vmatpush3.bf16.msra.mxu1 %v811_v8 }
  0x2c   : > { %730 = vmatprep.subr.bf16.mxu0 %v812_v9  ;;  %755 = vmatprep.subr.bf16.mxu1 %v812_v9 }
  0x2f   : > { %731 = vmatpush3.bf16.msra.mxu0 %v812_v9  ;;  %763 = vmatpush3.bf16.msra.mxu1 %v812_v9 }
  0x32   : > { %733 = vmatmul.mubr.bf16.vlgmr.msra.gmra.mxu0 %v815_v10  ;;  %741 = vmatmul.mubr.bf16.vlgmr.msra.gmra.mxu1 %v816_v11 }
  0x33   : > { %736 = vmatprep.mubr.bf16.mxu0 %v817_v12  ;;  %744 = vmatprep.mubr.bf16.mxu1 %v818_v13 }
  0x3a   : > { %737 = vmatmul.mubr.bf16.gmra.mxu0 %v819_v14  ;;  %745 = vmatmul.mubr.bf16.gmra.mxu1 %v820_v15 }
  0xf2   : > { %v734_v16 = vpop.f32.mrf.mxu0  ;;  %v742_v17 = vpop.f32.mrf.mxu1 }
  0xf4   : > { %v352_v18 = vpop.f32.mrf.mxu0  ;;  %v384_v19 = vpop.f32.mrf.mxu1 }
  0xf6   : > { %v735_v20 = vpop.f32.mrf.mxu0  ;;  %v743_v21 = vpop.f32.mrf.mxu1 }
  0xf7   : > { %v661_v22 = vpack.c.bf16 %v735_v20, %v734_v16  ;;  %v681_v23 = vpack.c.bf16 %v743_v21, %v742_v17 }
  0xf8   : > { %v355_v24 = vpop.f32.mrf.mxu0  ;;  %v387_v25 = vpop.f32.mrf.mxu1 }
  0xf9   : > { %693 = vst [vmem:[%s187_s30 + $0x8] sm:$0xff] %v661_v22   ;;  %697 = vst [vmem:[%s187_s30 + $0x28] sm:$0xff] %v681_v23   ;;  %v656_v26 = vpack.c.bf16 %v355_v24, %v352_v18  ;;  %v676_v27 = vpack.c.bf16 %v387_v25, %v384_v19 }
  0xfa   : > { %v738_v28 = vpop.f32.mrf.mxu0  ;;  %v746_v29 = vpop.f32.mrf.mxu1 }
  0xfb   : > { %657 = vst [vmem:[%s187_s30] sm:$0xff] %v656_v26   ;;  %696 = vst [vmem:[%s187_s30 + $0x20] sm:$0xff] %v676_v27  }
  0xfc   : > { %v368_v30 = vpop.f32.mrf.mxu0  ;;  %v400_v31 = vpop.f32.mrf.mxu1 }
  0xfe   : > { %v739_v32 = vpop.f32.mrf.mxu0  ;;  %v747_v33 = vpop.f32.mrf.mxu1 }
  0xff   : > { %v671_v34 = vpack.c.bf16 %v739_v32, %v738_v28  ;;  %v691_v35 = vpack.c.bf16 %v747_v33, %v746_v29 }
 0x100   : > { %v371_v36 = vpop.f32.mrf.mxu0  ;;  %v403_v37 = vpop.f32.mrf.mxu1 }
 0x101   : > { %695 = vst [vmem:[%s187_s30 + $0x18] sm:$0xff] %v671_v34   ;;  %699 = vst [vmem:[%s187_s30 + $0x38] sm:$0xff] %v691_v35   ;;  %v666_v38 = vpack.c.bf16 %v371_v36, %v368_v30  ;;  %v686_v39 = vpack.c.bf16 %v403_v37, %v400_v31 }
 0x103   : > { %694 = vst [vmem:[%s187_s30 + $0x10] sm:$0xff] %v666_v38   ;;  %698 = vst [vmem:[%s187_s30 + $0x30] sm:$0xff] %v686_v39  }
 0x104 PF: > { %s12_s13 = sadd.s32 1, %s859_s13   ;;  %s961_s9 = smov %s851_s11 }
 0x105   : > { %p9_p7 = scmp.ge.s32.totalorder %s12_s13, 14   ;;  %s962_s10 = smov %s855_s12 }
 0x106   : > { %s963_s11 = smov %s966_s14  ;;  %s964_s12 = smov %s970_s15 }
 0x107   :  { %11 = sbr.rel (!%p9_p7) target bundleno = 3 (0x3), region = 61 }

// kernel: node_classifier_forward.7
= control target key start
LH: loop header
LB: loop body
LE: loop exit
PB: predicated region body
PF: predicated region fallthrough
CT: control target
= control target key end

     0   :  { %s1520_s0 = inlined_call_operand.vmem [shape: s8[4,384,384], index: 0, kind: input, shape index: {}]   ;;  %s1521_s1 = inlined_call_operand.vmem [shape: f32[4,384,1], index: 1, kind: input, shape index: {}]   ;;  %s1522_s2 = inlined_call_operand.vmem [shape: bf16[4,384,128], index: 2, kind: input, shape index: {}]   ;;  %s1523_s3 = inlined_call_operand.vmem [shape: f32[1,128], index: 3, kind: input, shape index: {}]   ;;  %s1524_s4 = inlined_call_operand.vmem [shape: bf16[384,128], index: 4, kind: output, shape index: {}]  }
   0x1   :  { %1526 = sst [smem:[#allocation5_spill]] %s1520_s0 }
   0x2   :  { %s1320_s15 = smov 0   ;;  %s1322_s16 = smov 0  }
   0x3   :  { %s1324_s17 = smov 0   ;;  %s1326_s18 = smov 0  }
   0x4   :  { %s1328_s19 = smov 0   ;;  %s1330_s20 = smov 0  }
   0x5   :  { %s1332_s21 = smov 0   ;;  %s1334_s22 = smov 0  }
   0x6   :  { %s1336_s23 = smov 0  }
   0x7 LB: > { %s26_s24 = sadd.s32 1, %s1279_s20  ;;  %s29_s25 = sadd.s32 1, %s1283_s21  ;;  %s1291_s23 = sphi %s1336_s23, %s14_s23   ;;  %s1287_s22 = sphi %s1334_s22, %s1539_s22   ;;  %s1283_s21 = sphi %s1332_s21, %s1538_s21   ;;  %s1279_s20 = sphi %s1330_s20, %s1537_s20   ;;  %s1275_s19 = sphi %s1328_s19, %s1536_s19   ;;  %s1271_s18 = sphi %s1326_s18, %s1535_s18   ;;  %s1267_s17 = sphi %s1324_s17, %s1534_s17   ;;  %s1263_s16 = sphi %s1322_s16, %s1533_s16   ;;  %s1259_s15 = sphi %s1320_s15, %s1532_s15  }
   0x8   : > { %p27_p0 = scmp.ge.s32.totalorder %s26_s24, 3  ;;  %p51_p1 = scmp.ne.s32.totalorder %s1263_s16, %s1259_s15 }
   0x9   : > { %p52_p2 = scmp.eq.s32.totalorder %s1291_s23, 0  ;;  %s33_s26 = sadd.s32 1, %s1287_s22 }
   0xa   : > { %s1541_s25 = smov (!%p27_p0, %s29_s25), %s1283_s21  ;;  %s1547_s24 = smov (%p27_p0, %s26_s24), 0 }
   0xb   : > { %p31_p3 = scmp.ge.s32.totalorder %s1541_s25, 4  ;;  %p1372_p4 = por %p52_p2, %p51_p1 }
   0xc   : > { %s40_s29 = ssub.s32 %s1279_s20, %s1547_s24  ;;  %s44_s7 = sadd.s32 1, %s1263_s16 }
   0xd   : > { %s1543_s25 = smov (%p31_p3, %s1541_s25), 0  ;;  %s1545_s26 = smov (!%p31_p3, %s33_s26), %s1287_s22 }
   0xe   : > { %p35_p5 = scmp.ge.s32.totalorder %s1545_s26, 3  ;;  %s37_s28 = ssub.s32 %s1283_s21, %s1543_s25 }
   0xf   : > { %p967_p7 = scmp.ge.s32.totalorder %s1291_s23, 36 }
  0x10   : > { %s1549_s26 = smov (%p35_p5, %s1545_s26), 0 }
  0x11   : > { %1528 = sst [smem:[#allocation4_spill]] %s1549_s26  ;;  %s38_s30 = ssub.s32 %s1287_s22, %s1549_s26 }
  0x12   : > { %s39_s5 = sor.u32 %s38_s30, %s37_s28  ;;  %183 = sbr.rel (%p967_p7) target bundleno = 35 (0x23), region = 20 }
  0x13   : > { %s41_s6 = sor.u32 %s40_s29, %s39_s5 }
  0x14   : > { %p42_p6 = scmp.eq.s32.totalorder %s41_s6, 0 }
  0x16   : > { %s1391_s8 = scalar_select %p42_p6, %s1263_s16, %s44_s7  }
  0x17   : > { %186 = sbr.rel (!%p1372_p4) target bundleno = 35 (0x23), region = 24  ;;  %s188_s9 = sand.u32 (%p1372_p4), 1, %s1263_s16  }
  0x18   : > { %s1134_s10 = smul.u32 (%p1372_p4), 12, %s1287_s22  ;;  %s968_s11 = sshll.u32 (%p1372_p4), %s188_s9, 5 }
  0x19   : > { %s1135_s12 = smul.u32 (%p1372_p4), 36, %s1283_s21  ;;  %s1529_s0 = sld [smem:[#allocation5_spill]] (%p1372_p4) }
  0x1a   : > { %s193_s13 = sadd.s32 (%p1372_p4), %s1279_s20, %s1134_s10  ;;  %s190_s27 = scalar_lea.vmem (%p1372_p4), [#allocation3], %s968_s11 }
  0x1b   : > { %s195_s14 = sadd.s32 (%p1372_p4), %s1135_s12, %s193_s13 }
  0x1c   : > { %s971_s28 = sshll.u32 %s195_s14, 3 }
  0x1f   : > { %s197_s5 = scalar_lea.vmem %s1529_s0, %s971_s28 }
  0x20   : > { %v232_v0 = vld [vmem:[%s197_s5] sm:$0xff]  ;;  %v234_v1 = vld [vmem:[%s197_s5 + $0x18] sm:$0xff]  ;;  %v236_v2 = vld [vmem:[%s197_s5 + $0x30] sm:$0xff] }
  0x21   : > { %233 = vst [vmem:[%s190_s27] sm:$0xff] %v232_v0  ;;  %235 = vst [vmem:[%s190_s27 + $0x8] sm:$0xff] %v234_v1  ;;  %v238_v3 = vld [vmem:[%s197_s5 + $0x48] sm:$0xff] }
  0x22   : > { %237 = vst [vmem:[%s190_s27 + $0x10] sm:$0xff] %v236_v2  ;;  %239 = vst [vmem:[%s190_s27 + $0x18] sm:$0xff] %v238_v3 }
  0x23 PF: > { %p972_p8 = scmp.ge.s32.totalorder %s1291_s23, 1  ;;  %p270_p9 = scmp.lt.s32.totalorder %s1291_s23, 37 }
  0x25   : > { %p271_p10 = pnand %p972_p8, %p270_p9 }
  0x26   : > { %s277_s6 = sand.u32 (!%p271_p10), 1, %s1259_s15   ;;  %s974_s7 = sshll.u32 (!%p271_p10), %s1275_s19, 4 }
  0x27   : > { %274 = sbr.rel (%p271_p10) target bundleno = 327 (0x147), region = 70  ;;  %s973_s9 = sshll.u32 (!%p271_p10), %s277_s6, 5 }
  0x28   : > { %p322_p11 = scmp.lt.s32.totalorder (!%p271_p10), %s1271_s18, 3  ;;  %p324_p12 = scmp.lt.s32.totalorder (!%p271_p10), %s974_s7, 47 }
  0x29   : > { %s976_s12 = sshll.u32 (!%p271_p10), %s1267_s17, 4  ;;  %p348_p0 = scmp.eq.s32.totalorder (!%p271_p10), %s1271_s18, 0 }
  0x2a   : > { %p334_p13 = scmp.lt.s32.totalorder (!%p271_p10), %s976_s12, 47  ;;  %p349_p1 = scmp.eq.s32.totalorder (!%p271_p10), %s1267_s17, 0 }
  0x2b   : > { %s1427_s28 = scalar_lea.vmem (!%p271_p10), [#allocation3], %s973_s9 }
  0x2c   : > { %s323_s10 = scalar_select %p322_p11, %s1271_s18, 3 }
  0x2d   : > { %s1551_s7 = smov (!%p324_p12, %s974_s7), 47  ;;  %s1553_s12 = smov (!%p334_p13, %s976_s12), 47 }
  0x2e   : > { %s1136_s11 = smul.u32 48, %s323_s10  ;;  %s979_s13 = sshll.u32 %s1551_s7, 2 }
  0x2f   : > { %s1413_s30 = scalar_lea.vmem %s1524_s4, %s979_s13  ;;  %p350_p2 = pnand %p349_p1, %p348_p0 }
  0x30   : > { %s327_s14 = sadd.s32 %s1136_s11, %s1551_s7  ;;  %s337_s6 = sadd.s32 %s1136_s11, %s1553_s12 }
  0x31   : > { %s975_s5 = sshll.u32 %s327_s14, 3  ;;  %s977_s10 = sshll.u32 %s337_s6, 2 }
  0x32   : > { %s1419_s19 = scalar_lea.vmem %s1521_s1, %s975_s5  ;;  %s1425_s7 = scalar_lea.vmem %s1522_s2, %s977_s10 }
  0x33   : > { %353 = sbr.rel (%p350_p2) target bundleno = 65 (0x41), region = 78 }
  0x38   : > { %v1293_v4 = vmov 0.0  }
  0x39   : > { %354 = vst [vmem:[#allocation2 + $0x30] sm:$0xff] %v1293_v4  ;;  %355 = vst [vmem:[#allocation2] sm:$0xff] %v1293_v4 }
  0x3a   : > { %356 = vst [vmem:[#allocation2 + $0x58] sm:$0xff] %v1293_v4  ;;  %357 = vst [vmem:[#allocation2 + $0x18] sm:$0xff] %v1293_v4 }
  0x3b   : > { %358 = vst [vmem:[#allocation2 + $0x50] sm:$0xff] %v1293_v4  ;;  %359 = vst [vmem:[#allocation2 + $0x68] sm:$0xff] %v1293_v4 }
  0x3c   : > { %360 = vst [vmem:[#allocation2 + $0x8] sm:$0xff] %v1293_v4  ;;  %361 = vst [vmem:[#allocation2 + $0x48] sm:$0xff] %v1293_v4 }
  0x3d   : > { %362 = vst [vmem:[#allocation2 + $0x40] sm:$0xff] %v1293_v4  ;;  %363 = vst [vmem:[#allocation2 + $0x20] sm:$0xff] %v1293_v4 }
  0x3e   : > { %364 = vst [vmem:[#allocation2 + $0x10] sm:$0xff] %v1293_v4  ;;  %365 = vst [vmem:[#allocation2 + $0x38] sm:$0xff] %v1293_v4 }
  0x3f   : > { %366 = vst [vmem:[#allocation2 + $0x60] sm:$0xff] %v1293_v4  ;;  %367 = vst [vmem:[#allocation2 + $0x70] sm:$0xff] %v1293_v4 }
  0x40   : > { %368 = vst [vmem:[#allocation2 + $0x78] sm:$0xff] %v1293_v4  ;;  %369 = vst [vmem:[#allocation2 + $0x28] sm:$0xff] %v1293_v4 }
  0x41 PF: > { %v1213_v5 = vld [vmem:[%s1425_s7 + $0x38] sm:$0xff]   ;;  %v1214_v6 = vld [vmem:[%s1425_s7 + $0x30] sm:$0xff]   ;;  %v1294_v7 = vmov 0   ;;  %v1215_v8 = vld [vmem:[%s1425_s7 + $0x28] sm:$0xff]   ;;  %p703_p3 = scmp.eq.s32.totalorder %s1271_s18, 3  ;;  %p704_p4 = scmp.eq.s32.totalorder %s1267_s17, 2 }
  0x42   : > { %1212 = vset.pattern.permute.xlu1 %v1294_v7  ;;  %1211 = vset.pattern.permute.xlu0 %v1294_v7  ;;  %v1216_v9 = vld [vmem:[%s1425_s7 + $0x20] sm:$0xff]   ;;  %v1437_v11 = vld [vmem:[%s1427_s28 + $0x10] sm:$0xff]  ;;  %v562_v16 = vld [vmem:[%s1419_s19 + $0x18] sm:$0xff] }
  0x43   : > { %1086 = vmatprep.subr.bf16.mxu0 %v1213_v5  ;;  %1118 = vmatprep.subr.bf16.mxu1 %v1213_v5  ;;  %v1434_v10 = vld [vmem:[%s1427_s28] sm:$0xff]  ;;  %v378_v13 = vunpack.c.l.s8.bf16 %v1437_v11  ;;  %v561_v14 = vld [vmem:[%s1419_s19 + $0x10] sm:$0xff]  ;;  %v560_v17 = vld [vmem:[%s1419_s19 + $0x8] sm:$0xff]  ;;  %v379_v33 = vunpack.c.h.s8.bf16 %v1437_v11  ;;  %p1467_p5 = pnand %p704_p4, %p703_p3 }
  0x44   : > { %1087 = vmatpush3.bf16.msra.mxu0 %v1213_v5  ;;  %1126 = vmatpush3.bf16.msra.mxu1 %v1213_v5  ;;  %v374_v12 = vunpack.c.l.s8.bf16 %v1434_v10  ;;  %v559_v15 = vld [vmem:[%s1419_s19] sm:$0xff]  ;;  %v1217_v18 = vld [vmem:[%s1425_s7 + $0x18] sm:$0xff]   ;;  %v564_v19 = vld [vmem:[%s1419_s19 + $0x28] sm:$0xff]  ;;  %v375_v32 = vunpack.c.h.s8.bf16 %v1434_v10 }
  0x45   : > { %1088 = vmatprep.subr.bf16.mxu0 %v1214_v6  ;;  %1119 = vmatprep.subr.bf16.mxu1 %v1214_v6  ;;  %v563_v20 = vld [vmem:[%s1419_s19 + $0x20] sm:$0xff]  ;;  %v1218_v21 = vld [vmem:[%s1425_s7 + $0x10] sm:$0xff]   ;;  %v566_v22 = vld [vmem:[%s1419_s19 + $0x38] sm:$0xff] }
  0x46   : > { %587 = vperm.xlu1 %1212, %v561_v14   ;;  %577 = vperm.xlu0 %1211, %v559_v15   ;;  %v565_v23 = vld [vmem:[%s1419_s19 + $0x30] sm:$0xff]  ;;  %v1219_v24 = vld [vmem:[%s1425_s7 + $0x8] sm:$0xff]   ;;  %v567_v26 = vld [vmem:[%s1419_s19 + $0x40] sm:$0xff] }
  0x47   : > { %1102 = vmatprep.mubr.bf16.mxu0 %v374_v12  ;;  %1110 = vmatprep.mubr.bf16.mxu1 %v378_v13  ;;  %v568_v25 = vld [vmem:[%s1419_s19 + $0x48] sm:$0xff]  ;;  %v1220_v27 = vld [vmem:[%s1425_s7] sm:$0xff]   ;;  %v570_v28 = vld [vmem:[%s1419_s19 + $0x58] sm:$0xff] }
  0x48   : > { %1089 = vmatpush3.bf16.msra.mxu0 %v1214_v6  ;;  %1127 = vmatpush3.bf16.msra.mxu1 %v1214_v6  ;;  %v569_v29 = vld [vmem:[%s1419_s19 + $0x50] sm:$0xff]  ;;  %v371_v30 = vld [vmem:[%s1427_s28 + $0x8] sm:$0xff]  ;;  %v373_v31 = vld [vmem:[%s1427_s28 + $0x18] sm:$0xff] }
  0x49   : > { %1090 = vmatprep.subr.bf16.mxu0 %v1215_v8  ;;  %1120 = vmatprep.subr.bf16.mxu1 %v1215_v8  ;;  %v376_v34 = vunpack.c.l.s8.bf16 %v371_v30  ;;  %v380_v35 = vunpack.c.l.s8.bf16 %v373_v31  ;;  %v572_v36 = vld [vmem:[%s1419_s19 + $0x68] sm:$0xff]  ;;  %v571_v37 = vld [vmem:[%s1419_s19 + $0x60] sm:$0xff]  ;;  %v574_v38 = vld [vmem:[%s1419_s19 + $0x78] sm:$0xff]  ;;  %v377_v40 = vunpack.c.h.s8.bf16 %v371_v30  ;;  %v381_v41 = vunpack.c.h.s8.bf16 %v373_v31 }
  0x4a   : > { %592 = vperm.xlu1 %1212, %v562_v16   ;;  %582 = vperm.xlu0 %1211, %v560_v17   ;;  %v573_v39 = vld [vmem:[%s1419_s19 + $0x70] sm:$0xff]  ;;  %v545_v55 = vld [vmem:[#allocation2 + $0x58] sm:$0xff]  ;;  %v551_v0 = vld [vmem:[#allocation2 + $0x40] sm:$0xff] }
  0x4b   : > { %v553_v57 = vld [vmem:[#allocation2 + $0x10] sm:$0xff]  ;;  %v546_v6 = vld [vmem:[#allocation2 + $0x18] sm:$0xff]  ;;  %v544_v15 = vld [vmem:[#allocation2] sm:$0xff] }
  0x4c   : > { %1091 = vmatpush3.bf16.msra.mxu0 %v1215_v8  ;;  %1128 = vmatpush3.bf16.msra.mxu1 %v1215_v8  ;;  %v543_v62 = vld [vmem:[#allocation2 + $0x30] sm:$0xff]  ;;  %v554_v8 = vld [vmem:[#allocation2 + $0x38] sm:$0xff]  ;;  %v552_v17 = vld [vmem:[#allocation2 + $0x20] sm:$0xff] }
  0x4d   : > { %1092 = vmatprep.subr.bf16.mxu0 %v1216_v9  ;;  %1121 = vmatprep.subr.bf16.mxu1 %v1216_v9 }
  0x4e   : > { %602 = vperm.xlu1 %1212, %v564_v19   ;;  %597 = vperm.xlu0 %1211, %v563_v20  }
  0x50   : > { %1093 = vmatpush3.bf16.msra.mxu0 %v1216_v9  ;;  %1129 = vmatpush3.bf16.msra.mxu1 %v1216_v9 }
  0x51   : > { %1094 = vmatprep.subr.bf16.mxu0 %v1217_v18  ;;  %1122 = vmatprep.subr.bf16.mxu1 %v1217_v18 }
  0x52   : > { %612 = vperm.xlu1 %1212, %v566_v22   ;;  %607 = vperm.xlu0 %1211, %v565_v23  }
  0x54   : > { %1095 = vmatpush3.bf16.msra.mxu0 %v1217_v18  ;;  %1130 = vmatpush3.bf16.msra.mxu1 %v1217_v18 }
  0x55   : > { %1096 = vmatprep.subr.bf16.mxu0 %v1218_v21  ;;  %1123 = vmatprep.subr.bf16.mxu1 %v1218_v21 }
  0x56   : > { %622 = vperm.xlu1 %1212, %v568_v25   ;;  %617 = vperm.xlu0 %1211, %v567_v26   ;;  %v557_v26 = vld [vmem:[#allocation2 + $0x78] sm:$0xff] }
  0x58   : > { %1097 = vmatpush3.bf16.msra.mxu0 %v1218_v21  ;;  %1131 = vmatpush3.bf16.msra.mxu1 %v1218_v21 }
  0x59   : > { %1098 = vmatprep.subr.bf16.mxu0 %v1219_v24  ;;  %1124 = vmatprep.subr.bf16.mxu1 %v1219_v24 }
  0x5a   : > { %632 = vperm.xlu1 %1212, %v570_v28   ;;  %627 = vperm.xlu0 %1211, %v569_v29  }
  0x5c   : > { %1099 = vmatpush3.bf16.msra.mxu0 %v1219_v24  ;;  %1132 = vmatpush3.bf16.msra.mxu1 %v1219_v24  ;;  %v549_v24 = vld [vmem:[#allocation2 + $0x8] sm:$0xff] }
  0x5d   : > { %1100 = vmatprep.subr.bf16.mxu0 %v1220_v27  ;;  %1125 = vmatprep.subr.bf16.mxu1 %v1220_v27 }
  0x5e   : > { %642 = vperm.xlu1 %1212, %v572_v36   ;;  %637 = vperm.xlu0 %1211, %v571_v37  }
  0x60   : > { %1101 = vmatpush3.bf16.msra.mxu0 %v1220_v27  ;;  %1133 = vmatpush3.bf16.msra.mxu1 %v1220_v27 }
  0x62   : > { %652 = vperm.xlu1 %1212, %v574_v38   ;;  %647 = vperm.xlu0 %1211, %v573_v39  }
  0x63   : > { %1103 = vmatmul.mubr.bf16.vlgmr.msra.gmra.mxu0 %v375_v32  ;;  %1111 = vmatmul.mubr.bf16.vlgmr.msra.gmra.mxu1 %v379_v33  ;;  %v547_v32 = vld [vmem:[#allocation2 + $0x50] sm:$0xff] }
  0x64   : > { %1106 = vmatprep.mubr.bf16.mxu0 %v376_v34  ;;  %1114 = vmatprep.mubr.bf16.mxu1 %v380_v35  ;;  %v555_v34 = vld [vmem:[#allocation2 + $0x60] sm:$0xff] }
  0x6b   : > { %1107 = vmatmul.mubr.bf16.gmra.mxu0 %v377_v40  ;;  %1115 = vmatmul.mubr.bf16.gmra.mxu1 %v381_v41  ;;  %v550_v41 = vld [vmem:[#allocation2 + $0x48] sm:$0xff] }
  0xc1   : > { %v578_v42 = vpop.permute.xlu0 %577  ;;  %v588_v43 = vpop.permute.xlu1 %587 }
  0xc5   : > { %v583_v44 = vpop.permute.xlu0 %582  ;;  %v593_v45 = vpop.permute.xlu1 %592 }
  0xc9   : > { %v1471_v46 = vpop.permute.xlu0 %597  ;;  %v1473_v47 = vpop.permute.xlu1 %602 }
  0xcd   : > { %v608_v48 = vpop.permute.xlu0 %607  ;;  %v1475_v49 = vpop.permute.xlu1 %612 }
  0xd1   : > { %v618_v50 = vpop.permute.xlu0 %617  ;;  %v623_v51 = vpop.permute.xlu1 %622 }
  0xd5   : > { %v628_v52 = vpop.permute.xlu0 %627  ;;  %v633_v53 = vpop.permute.xlu1 %632 }
  0xd9   : > { %v638_v58 = vpop.permute.xlu0 %637  ;;  %v643_v9 = vpop.permute.xlu1 %642 }
  0xdd   : > { %v648_v18 = vpop.permute.xlu0 %647  ;;  %v653_v35 = vpop.permute.xlu1 %652 }
 0x123   : > { %v1104_v54 = vpop.f32.mrf.mxu0  ;;  %v1112_v56 = vpop.f32.mrf.mxu1 }
 0x124   : > { %v657_v59 = vmul.f32 %v1104_v54, %v588_v43  ;;  %v665_v60 = vmul.f32 %v1112_v56, %v628_v52  ;;  %v558_v43 = vld [vmem:[#allocation2 + $0x28] sm:$0xff]  ;;  %v556_v54 = vld [vmem:[#allocation2 + $0x70] sm:$0xff] }
 0x125   : > { %v480_v61 = vpop.f32.mrf.mxu0  ;;  %v512_v63 = vpop.f32.mrf.mxu1  ;;  %v548_v52 = vld [vmem:[#allocation2 + $0x68] sm:$0xff] }
 0x126   : > { %v673_v1 = vadd.f32 %v657_v59, %v545_v55  ;;  %v681_v2 = vadd.f32 %v665_v60, %v553_v57  ;;  %v655_v3 = vmul.f32 %v578_v42, %v480_v61  ;;  %v663_v4 = vmul.f32 %v618_v50, %v512_v63 }
 0x127   : > { %v1105_v5 = vpop.f32.mrf.mxu0  ;;  %v1113_v7 = vpop.f32.mrf.mxu1 }
 0x128   : > { %689 = vst [vmem:[#allocation2 + $0x58] sm:$0xff] %v673_v1  ;;  %697 = vst [vmem:[#allocation2 + $0x10] sm:$0xff] %v681_v2  ;;  %v671_v10 = vadd.f32 %v655_v3, %v543_v62  ;;  %v679_v11 = vadd.f32 %v663_v4, %v551_v0  ;;  %v658_v12 = vmul.f32 %v1105_v5, %v593_v45 }
 0x129   : > { %v666_v13 = vmul.f32 %v1113_v7, %v633_v53  ;;  %v483_v14 = vpop.f32.mrf.mxu0  ;;  %v515_v16 = vpop.f32.mrf.mxu1 }
 0x12a   : > { %687 = vst [vmem:[#allocation2 + $0x30] sm:$0xff] %v671_v10  ;;  %695 = vst [vmem:[#allocation2 + $0x40] sm:$0xff] %v679_v11  ;;  %v674_v19 = vadd.f32 %v658_v12, %v546_v6  ;;  %v656_v21 = vmul.f32 %v583_v44, %v483_v14  ;;  %v664_v22 = vmul.f32 %v623_v51, %v515_v16 }
 0x12b   : > { %v682_v20 = vadd.f32 %v666_v13, %v554_v8  ;;  %v1108_v23 = vpop.f32.mrf.mxu0  ;;  %v1116_v25 = vpop.f32.mrf.mxu1 }
 0x12c   : > { %690 = vst [vmem:[#allocation2 + $0x18] sm:$0xff] %v674_v19  ;;  %v672_v27 = vadd.f32 %v656_v21, %v544_v15  ;;  %v680_v28 = vadd.f32 %v664_v22, %v552_v17  ;;  %v661_v29 = vmul.f32 %v1108_v23, %v608_v48  ;;  %v669_v30 = vmul.f32 %v1116_v25, %v648_v18 }
 0x12d   : > { %698 = vst [vmem:[#allocation2 + $0x38] sm:$0xff] %v682_v20  ;;  %v496_v31 = vpop.f32.mrf.mxu0  ;;  %v528_v33 = vpop.f32.mrf.mxu1 }
 0x12e   : > { %688 = vst [vmem:[#allocation2] sm:$0xff] %v672_v27  ;;  %696 = vst [vmem:[#allocation2 + $0x20] sm:$0xff] %v680_v28  ;;  %v677_v36 = vadd.f32 %v661_v29, %v549_v24  ;;  %v685_v37 = vadd.f32 %v669_v30, %v557_v26  ;;  %v659_v38 = vmul.f32 %v1471_v46, %v496_v31 }
 0x12f   : > { %v667_v39 = vmul.f32 %v638_v58, %v528_v33  ;;  %v1109_v40 = vpop.f32.mrf.mxu0  ;;  %v1117_v42 = vpop.f32.mrf.mxu1 }
 0x130   : > { %693 = vst [vmem:[#allocation2 + $0x8] sm:$0xff] %v677_v36  ;;  %701 = vst [vmem:[#allocation2 + $0x78] sm:$0xff] %v685_v37  ;;  %v675_v44 = vadd.f32 %v659_v38, %v547_v32  ;;  %v662_v48 = vmul.f32 %v1109_v40, %v1475_v49  ;;  %v670_v50 = vmul.f32 %v1117_v42, %v653_v35 }
 0x131   : > { %v683_v45 = vadd.f32 %v667_v39, %v555_v34  ;;  %v499_v51 = vpop.f32.mrf.mxu0  ;;  %v531_v53 = vpop.f32.mrf.mxu1 }
 0x132   : > { %691 = vst [vmem:[#allocation2 + $0x50] sm:$0xff] %v675_v44  ;;  %v678_v55 = vadd.f32 %v662_v48, %v550_v41  ;;  %v686_v46 = vadd.f32 %v670_v50, %v558_v43  ;;  %v660_v56 = vmul.f32 %v1473_v47, %v499_v51  ;;  %v668_v57 = vmul.f32 %v643_v9, %v531_v53  ;;  %708 = sbr.rel (%p1467_p5) target bundleno = 327 (0x147), region = 82 }
 0x133   : > { %699 = vst [vmem:[#allocation2 + $0x60] sm:$0xff] %v683_v45 }
 0x134   : > { %694 = vst [vmem:[#allocation2 + $0x48] sm:$0xff] %v678_v55  ;;  %702 = vst [vmem:[#allocation2 + $0x28] sm:$0xff] %v686_v46  ;;  %v676_v58 = vadd.f32 %v660_v56, %v548_v52  ;;  %v684_v59 = vadd.f32 %v668_v57, %v556_v54 }
 0x136   : > { %692 = vst [vmem:[#allocation2 + $0x68] sm:$0xff] %v676_v58  ;;  %700 = vst [vmem:[#allocation2 + $0x70] sm:$0xff] %v684_v59 }
 0x137   : > { %v709_v49 = vld [vmem:[#allocation2 + $0x30] sm:$0xff]  ;;  %v710_v60 = vld [vmem:[#allocation2] sm:$0xff]  ;;  %v711_v0 = vld [vmem:[#allocation2 + $0x58] sm:$0xff] }
 0x138   : > { %v988_v61 = vld [vmem:[%s1523_s3] ss:$0 sm:$0xff]  ;;  %v712_v47 = vld [vmem:[#allocation2 + $0x18] sm:$0xff]  ;;  %v715_v6 = vld [vmem:[#allocation2 + $0x8] sm:$0xff] }
 0x139   : > { %v732_v62 = vadd.f32 %v988_v61, %v709_v49  ;;  %v733_v63 = vadd.f32 %v988_v61, %v710_v60  ;;  %v713_v1 = vld [vmem:[#allocation2 + $0x50] sm:$0xff]  ;;  %v734_v2 = vadd.f32 %v988_v61, %v711_v0  ;;  %v735_v3 = vadd.f32 %v988_v61, %v712_v47  ;;  %v717_v12 = vld [vmem:[#allocation2 + $0x40] sm:$0xff]  ;;  %v720_v19 = vld [vmem:[#allocation2 + $0x38] sm:$0xff] }
 0x13a   : > { %v736_v5 = vadd.f32 %v988_v61, %v713_v1  ;;  %v738_v11 = vadd.f32 %v988_v61, %v715_v6  ;;  %v718_v13 = vld [vmem:[#allocation2 + $0x20] sm:$0xff]  ;;  %v719_v14 = vld [vmem:[#allocation2 + $0x10] sm:$0xff]  ;;  %v740_v24 = vadd.f32 %v988_v61, %v717_v12  ;;  %v723_v30 = vld [vmem:[#allocation2 + $0x78] sm:$0xff]  ;;  %v743_v34 = vadd.f32 %v988_v61, %v720_v19 }
 0x13b   : > { %v716_v7 = vld [vmem:[#allocation2 + $0x48] sm:$0xff]  ;;  %v748_v8 = vmax.f32 %v732_v62, 0.0  ;;  %v749_v9 = vmax.f32 %v733_v63, 0.0  ;;  %v750_v15 = vmax.f32 %v734_v2, 0.0  ;;  %v751_v16 = vmax.f32 %v735_v3, 0.0  ;;  %v721_v20 = vld [vmem:[#allocation2 + $0x60] sm:$0xff] }
 0x13c   : > { %v752_v17 = vmax.f32 %v736_v5, 0.0  ;;  %v739_v18 = vadd.f32 %v988_v61, %v716_v7  ;;  %v754_v23 = vmax.f32 %v738_v11, 0.0  ;;  %v741_v28 = vadd.f32 %v988_v61, %v718_v13  ;;  %v724_v31 = vld [vmem:[#allocation2 + $0x28] sm:$0xff] }
 0x13d   : > { %v714_v4 = vld [vmem:[#allocation2 + $0x68] sm:$0xff]  ;;  %v1026_v21 = vpack.c.bf16 %v749_v9, %v748_v8  ;;  %v722_v25 = vld [vmem:[#allocation2 + $0x70] sm:$0xff]  ;;  %v1031_v26 = vpack.c.bf16 %v751_v16, %v750_v15  ;;  %v742_v29 = vadd.f32 %v988_v61, %v719_v14  ;;  %v756_v33 = vmax.f32 %v740_v24, 0.0 }
 0x13e   : > { %v737_v10 = vadd.f32 %v988_v61, %v714_v4  ;;  %v755_v27 = vmax.f32 %v739_v18, 0.0  ;;  %v744_v35 = vadd.f32 %v988_v61, %v721_v20  ;;  %v757_v37 = vmax.f32 %v741_v28, 0.0 }
 0x13f   : > { %1027 = vst [vmem:[%s1413_s30] sm:$0xff] %v1026_v21   ;;  %1063 = vst [vmem:[%s1413_s30 + $0x8] sm:$0xff] %v1031_v26   ;;  %v758_v38 = vmax.f32 %v742_v29, 0.0  ;;  %v745_v39 = vadd.f32 %v988_v61, %v722_v25  ;;  %v759_v40 = vmax.f32 %v743_v34, 0.0  ;;  %v746_v42 = vadd.f32 %v988_v61, %v723_v30 }
 0x140   : > { %v753_v22 = vmax.f32 %v737_v10, 0.0  ;;  %v1041_v36 = vpack.c.bf16 %v755_v27, %v754_v23  ;;  %v760_v41 = vmax.f32 %v744_v35, 0.0  ;;  %v747_v43 = vadd.f32 %v988_v61, %v724_v31 }
 0x141   : > { %v1046_v44 = vpack.c.bf16 %v757_v37, %v756_v33  ;;  %v761_v45 = vmax.f32 %v745_v39, 0.0  ;;  %v1051_v48 = vpack.c.bf16 %v759_v40, %v758_v38  ;;  %v762_v50 = vmax.f32 %v746_v42, 0.0 }
 0x142   : > { %v1036_v32 = vpack.c.bf16 %v753_v22, %v752_v17  ;;  %1065 = vst [vmem:[%s1413_s30 + $0x18] sm:$0xff] %v1041_v36   ;;  %v763_v51 = vmax.f32 %v747_v43, 0.0 }
 0x143   : > { %1066 = vst [vmem:[%s1413_s30 + $0x20] sm:$0xff] %v1046_v44   ;;  %v1056_v52 = vpack.c.bf16 %v761_v45, %v760_v41  ;;  %1067 = vst [vmem:[%s1413_s30 + $0x28] sm:$0xff] %v1051_v48  }
 0x144   : > { %1064 = vst [vmem:[%s1413_s30 + $0x10] sm:$0xff] %v1036_v32   ;;  %v1061_v53 = vpack.c.bf16 %v763_v51, %v762_v50 }
 0x145   : > { %1068 = vst [vmem:[%s1413_s30 + $0x30] sm:$0xff] %v1056_v52  }
 0x146   : > { %1069 = vst [vmem:[%s1413_s30 + $0x38] sm:$0xff] %v1061_v53  }
 0x147 PF: > { %s14_s23 = sadd.s32 1, %s1291_s23   ;;  %s1531_s26 = sld [smem:[#allocation4_spill]] }
 0x148   : > { %p11_p6 = scmp.ge.s32.totalorder %s14_s23, 38   ;;  %s1532_s15 = smov %s1263_s16 }
 0x149   : > { %s1533_s16 = smov %s1391_s8  ;;  %s1534_s17 = smov %s1279_s20 }
 0x14a   : > { %s1535_s18 = smov %s1283_s21  ;;  %s1536_s19 = smov %s1287_s22 }
 0x14b   : > { %s1537_s20 = smov %s1547_s24  ;;  %s1538_s21 = smov %s1543_s25 }
 0x14c   :  { %13 = sbr.rel (!%p11_p6) target bundleno = 7 (0x7), region = 123 }
 0x14d   : > { %s1539_s22 = smov %s1531_s26 }

// kernel: node_classifier_forward.9
= control target key start
LH: loop header
LB: loop body
LE: loop exit
PB: predicated region body
PF: predicated region fallthrough
CT: control target
= control target key end

     0   :  { %s1369_s0 = inlined_call_operand.vmem [shape: s8[4,384,384], index: 0, kind: input, shape index: {}]   ;;  %s1370_s1 = inlined_call_operand.vmem [shape: f32[4,384,1], index: 1, kind: input, shape index: {}]   ;;  %s1371_s2 = inlined_call_operand.vmem [shape: bf16[4,384,128], index: 2, kind: input, shape index: {}]   ;;  %s1372_s3 = inlined_call_operand.vmem [shape: f32[1,128], index: 3, kind: input, shape index: {}]   ;;  %s1373_s4 = inlined_call_operand.vmem [shape: f32[384,128], index: 4, kind: output, shape index: {}]  }
   0x1   :  { %1375 = sst [smem:[#allocation5_spill]] %s1369_s0 }
   0x2   :  { %s1161_s15 = smov 0   ;;  %s1163_s16 = smov 0  }
   0x3   :  { %s1165_s17 = smov 0   ;;  %s1167_s18 = smov 0  }
   0x4   :  { %s1169_s19 = smov 0   ;;  %s1171_s20 = smov 0  }
   0x5   :  { %s1173_s21 = smov 0   ;;  %s1175_s22 = smov 0  }
   0x6   :  { %s1177_s23 = smov 0  }
   0x7 LB: > { %s26_s24 = sadd.s32 1, %s1120_s20  ;;  %s29_s25 = sadd.s32 1, %s1124_s21  ;;  %s1132_s23 = sphi %s1177_s23, %s14_s23   ;;  %s1128_s22 = sphi %s1175_s22, %s1388_s22   ;;  %s1124_s21 = sphi %s1173_s21, %s1387_s21   ;;  %s1120_s20 = sphi %s1171_s20, %s1386_s20   ;;  %s1116_s19 = sphi %s1169_s19, %s1385_s19   ;;  %s1112_s18 = sphi %s1167_s18, %s1384_s18   ;;  %s1108_s17 = sphi %s1165_s17, %s1383_s17   ;;  %s1104_s16 = sphi %s1163_s16, %s1382_s16   ;;  %s1100_s15 = sphi %s1161_s15, %s1381_s15  }
   0x8   : > { %p27_p0 = scmp.ge.s32.totalorder %s26_s24, 3  ;;  %p51_p1 = scmp.ne.s32.totalorder %s1104_s16, %s1100_s15 }
   0x9   : > { %p52_p2 = scmp.eq.s32.totalorder %s1132_s23, 0  ;;  %s33_s26 = sadd.s32 1, %s1128_s22 }
   0xa   : > { %s1390_s25 = smov (!%p27_p0, %s29_s25), %s1124_s21  ;;  %s1396_s24 = smov (%p27_p0, %s26_s24), 0 }
   0xb   : > { %p31_p3 = scmp.ge.s32.totalorder %s1390_s25, 4  ;;  %p1213_p4 = por %p52_p2, %p51_p1 }
   0xc   : > { %s40_s29 = ssub.s32 %s1120_s20, %s1396_s24  ;;  %s44_s7 = sadd.s32 1, %s1104_s16 }
   0xd   : > { %s1392_s25 = smov (%p31_p3, %s1390_s25), 0  ;;  %s1394_s26 = smov (!%p31_p3, %s33_s26), %s1128_s22 }
   0xe   : > { %p35_p5 = scmp.ge.s32.totalorder %s1394_s26, 3  ;;  %s37_s28 = ssub.s32 %s1124_s21, %s1392_s25 }
   0xf   : > { %p887_p7 = scmp.ge.s32.totalorder %s1132_s23, 36 }
  0x10   : > { %s1398_s26 = smov (%p35_p5, %s1394_s26), 0 }
  0x11   : > { %1377 = sst [smem:[#allocation4_spill]] %s1398_s26  ;;  %s38_s30 = ssub.s32 %s1128_s22, %s1398_s26 }
  0x12   : > { %s39_s5 = sor.u32 %s38_s30, %s37_s28  ;;  %183 = sbr.rel (%p887_p7) target bundleno = 35 (0x23), region = 20 }
  0x13   : > { %s41_s6 = sor.u32 %s40_s29, %s39_s5 }
  0x14   : > { %p42_p6 = scmp.eq.s32.totalorder %s41_s6, 0 }
  0x16   : > { %s1232_s8 = scalar_select %p42_p6, %s1104_s16, %s44_s7  }
  0x17   : > { %186 = sbr.rel (!%p1213_p4) target bundleno = 35 (0x23), region = 24  ;;  %s188_s9 = sand.u32 (%p1213_p4), 1, %s1104_s16  }
  0x18   : > { %s975_s10 = smul.u32 (%p1213_p4), 12, %s1128_s22  ;;  %s888_s11 = sshll.u32 (%p1213_p4), %s188_s9, 5 }
  0x19   : > { %s976_s12 = smul.u32 (%p1213_p4), 36, %s1124_s21  ;;  %s1378_s0 = sld [smem:[#allocation5_spill]] (%p1213_p4) }
  0x1a   : > { %s193_s13 = sadd.s32 (%p1213_p4), %s1120_s20, %s975_s10  ;;  %s190_s27 = scalar_lea.vmem (%p1213_p4), [#allocation3], %s888_s11 }
  0x1b   : > { %s195_s14 = sadd.s32 (%p1213_p4), %s976_s12, %s193_s13 }
  0x1c   : > { %s891_s28 = sshll.u32 %s195_s14, 3 }
  0x1f   : > { %s197_s5 = scalar_lea.vmem %s1378_s0, %s891_s28 }
  0x20   : > { %v232_v0 = vld [vmem:[%s197_s5] sm:$0xff]  ;;  %v234_v1 = vld [vmem:[%s197_s5 + $0x18] sm:$0xff]  ;;  %v236_v2 = vld [vmem:[%s197_s5 + $0x30] sm:$0xff] }
  0x21   : > { %233 = vst [vmem:[%s190_s27] sm:$0xff] %v232_v0  ;;  %235 = vst [vmem:[%s190_s27 + $0x8] sm:$0xff] %v234_v1  ;;  %v238_v3 = vld [vmem:[%s197_s5 + $0x48] sm:$0xff] }
  0x22   : > { %237 = vst [vmem:[%s190_s27 + $0x10] sm:$0xff] %v236_v2  ;;  %239 = vst [vmem:[%s190_s27 + $0x18] sm:$0xff] %v238_v3 }
  0x23 PF: > { %p892_p8 = scmp.ge.s32.totalorder %s1132_s23, 1  ;;  %p270_p9 = scmp.lt.s32.totalorder %s1132_s23, 37 }
  0x25   : > { %p271_p10 = pnand %p892_p8, %p270_p9 }
  0x26   : > { %s277_s6 = sand.u32 (!%p271_p10), 1, %s1100_s15   ;;  %s894_s7 = sshll.u32 (!%p271_p10), %s1116_s19, 4 }
  0x27   : > { %274 = sbr.rel (%p271_p10) target bundleno = 322 (0x142), region = 70  ;;  %s893_s9 = sshll.u32 (!%p271_p10), %s277_s6, 5 }
  0x28   : > { %p322_p11 = scmp.lt.s32.totalorder (!%p271_p10), %s1112_s18, 3  ;;  %p324_p12 = scmp.lt.s32.totalorder (!%p271_p10), %s894_s7, 47 }
  0x29   : > { %s896_s12 = sshll.u32 (!%p271_p10), %s1108_s17, 4  ;;  %p348_p0 = scmp.eq.s32.totalorder (!%p271_p10), %s1112_s18, 0 }
  0x2a   : > { %p334_p13 = scmp.lt.s32.totalorder (!%p271_p10), %s896_s12, 47  ;;  %p349_p1 = scmp.eq.s32.totalorder (!%p271_p10), %s1108_s17, 0 }
  0x2b   : > { %s1268_s28 = scalar_lea.vmem (!%p271_p10), [#allocation3], %s893_s9 }
  0x2c   : > { %s323_s10 = scalar_select %p322_p11, %s1112_s18, 3 }
  0x2d   : > { %s1400_s7 = smov (!%p324_p12, %s894_s7), 47  ;;  %s1402_s12 = smov (!%p334_p13, %s896_s12), 47 }
  0x2e   : > { %s977_s11 = smul.u32 48, %s323_s10  ;;  %s899_s13 = sshll.u32 %s1400_s7, 3 }
  0x2f   : > { %s1254_s30 = scalar_lea.vmem %s1373_s4, %s899_s13  ;;  %p350_p2 = pnand %p349_p1, %p348_p0 }
  0x30   : > { %s327_s14 = sadd.s32 %s977_s11, %s1400_s7  ;;  %s337_s6 = sadd.s32 %s977_s11, %s1402_s12 }
  0x31   : > { %s895_s5 = sshll.u32 %s327_s14, 3  ;;  %s897_s10 = sshll.u32 %s337_s6, 2 }
  0x32   : > { %s1260_s19 = scalar_lea.vmem %s1370_s1, %s895_s5  ;;  %s1266_s7 = scalar_lea.vmem %s1371_s2, %s897_s10 }
  0x33   : > { %353 = sbr.rel (%p350_p2) target bundleno = 65 (0x41), region = 78 }
  0x38   : > { %v1134_v4 = vmov 0.0  }
  0x39   : > { %354 = vst [vmem:[#allocation2 + $0x30] sm:$0xff] %v1134_v4  ;;  %355 = vst [vmem:[#allocation2] sm:$0xff] %v1134_v4 }
  0x3a   : > { %356 = vst [vmem:[#allocation2 + $0x58] sm:$0xff] %v1134_v4  ;;  %357 = vst [vmem:[#allocation2 + $0x18] sm:$0xff] %v1134_v4 }
  0x3b   : > { %358 = vst [vmem:[#allocation2 + $0x50] sm:$0xff] %v1134_v4  ;;  %359 = vst [vmem:[#allocation2 + $0x68] sm:$0xff] %v1134_v4 }
  0x3c   : > { %360 = vst [vmem:[#allocation2 + $0x8] sm:$0xff] %v1134_v4  ;;  %361 = vst [vmem:[#allocation2 + $0x48] sm:$0xff] %v1134_v4 }
  0x3d   : > { %362 = vst [vmem:[#allocation2 + $0x40] sm:$0xff] %v1134_v4  ;;  %363 = vst [vmem:[#allocation2 + $0x20] sm:$0xff] %v1134_v4 }
  0x3e   : > { %364 = vst [vmem:[#allocation2 + $0x10] sm:$0xff] %v1134_v4  ;;  %365 = vst [vmem:[#allocation2 + $0x38] sm:$0xff] %v1134_v4 }
  0x3f   : > { %366 = vst [vmem:[#allocation2 + $0x60] sm:$0xff] %v1134_v4  ;;  %367 = vst [vmem:[#allocation2 + $0x70] sm:$0xff] %v1134_v4 }
  0x40   : > { %368 = vst [vmem:[#allocation2 + $0x78] sm:$0xff] %v1134_v4  ;;  %369 = vst [vmem:[#allocation2 + $0x28] sm:$0xff] %v1134_v4 }
  0x41 PF: > { %v1054_v5 = vld [vmem:[%s1266_s7 + $0x38] sm:$0xff]   ;;  %v1055_v6 = vld [vmem:[%s1266_s7 + $0x30] sm:$0xff]   ;;  %v1135_v7 = vmov 0   ;;  %v1056_v8 = vld [vmem:[%s1266_s7 + $0x28] sm:$0xff]   ;;  %p703_p3 = scmp.eq.s32.totalorder %s1112_s18, 3  ;;  %p704_p4 = scmp.eq.s32.totalorder %s1108_s17, 2 }
  0x42   : > { %1053 = vset.pattern.permute.xlu1 %v1135_v7  ;;  %1052 = vset.pattern.permute.xlu0 %v1135_v7  ;;  %v1057_v9 = vld [vmem:[%s1266_s7 + $0x20] sm:$0xff]   ;;  %v1278_v11 = vld [vmem:[%s1268_s28 + $0x10] sm:$0xff]  ;;  %v562_v16 = vld [vmem:[%s1260_s19 + $0x18] sm:$0xff] }
  0x43   : > { %927 = vmatprep.subr.bf16.mxu0 %v1054_v5  ;;  %959 = vmatprep.subr.bf16.mxu1 %v1054_v5  ;;  %v1275_v10 = vld [vmem:[%s1268_s28] sm:$0xff]  ;;  %v378_v13 = vunpack.c.l.s8.bf16 %v1278_v11  ;;  %v561_v14 = vld [vmem:[%s1260_s19 + $0x10] sm:$0xff]  ;;  %v560_v17 = vld [vmem:[%s1260_s19 + $0x8] sm:$0xff]  ;;  %v379_v33 = vunpack.c.h.s8.bf16 %v1278_v11  ;;  %p1308_p5 = pnand %p704_p4, %p703_p3 }
  0x44   : > { %928 = vmatpush3.bf16.msra.mxu0 %v1054_v5  ;;  %967 = vmatpush3.bf16.msra.mxu1 %v1054_v5  ;;  %v374_v12 = vunpack.c.l.s8.bf16 %v1275_v10  ;;  %v559_v15 = vld [vmem:[%s1260_s19] sm:$0xff]  ;;  %v1058_v18 = vld [vmem:[%s1266_s7 + $0x18] sm:$0xff]   ;;  %v564_v19 = vld [vmem:[%s1260_s19 + $0x28] sm:$0xff]  ;;  %v375_v32 = vunpack.c.h.s8.bf16 %v1275_v10 }
  0x45   : > { %929 = vmatprep.subr.bf16.mxu0 %v1055_v6  ;;  %960 = vmatprep.subr.bf16.mxu1 %v1055_v6  ;;  %v563_v20 = vld [vmem:[%s1260_s19 + $0x20] sm:$0xff]  ;;  %v1059_v21 = vld [vmem:[%s1266_s7 + $0x10] sm:$0xff]   ;;  %v566_v22 = vld [vmem:[%s1260_s19 + $0x38] sm:$0xff] }
  0x46   : > { %587 = vperm.xlu1 %1053, %v561_v14   ;;  %577 = vperm.xlu0 %1052, %v559_v15   ;;  %v565_v23 = vld [vmem:[%s1260_s19 + $0x30] sm:$0xff]  ;;  %v1060_v24 = vld [vmem:[%s1266_s7 + $0x8] sm:$0xff]   ;;  %v567_v26 = vld [vmem:[%s1260_s19 + $0x40] sm:$0xff] }
  0x47   : > { %943 = vmatprep.mubr.bf16.mxu0 %v374_v12  ;;  %951 = vmatprep.mubr.bf16.mxu1 %v378_v13  ;;  %v568_v25 = vld [vmem:[%s1260_s19 + $0x48] sm:$0xff]  ;;  %v1061_v27 = vld [vmem:[%s1266_s7] sm:$0xff]   ;;  %v570_v28 = vld [vmem:[%s1260_s19 + $0x58] sm:$0xff] }
  0x48   : > { %930 = vmatpush3.bf16.msra.mxu0 %v1055_v6  ;;  %968 = vmatpush3.bf16.msra.mxu1 %v1055_v6  ;;  %v569_v29 = vld [vmem:[%s1260_s19 + $0x50] sm:$0xff]  ;;  %v371_v30 = vld [vmem:[%s1268_s28 + $0x8] sm:$0xff]  ;;  %v373_v31 = vld [vmem:[%s1268_s28 + $0x18] sm:$0xff] }
  0x49   : > { %931 = vmatprep.subr.bf16.mxu0 %v1056_v8  ;;  %961 = vmatprep.subr.bf16.mxu1 %v1056_v8  ;;  %v376_v34 = vunpack.c.l.s8.bf16 %v371_v30  ;;  %v380_v35 = vunpack.c.l.s8.bf16 %v373_v31  ;;  %v572_v36 = vld [vmem:[%s1260_s19 + $0x68] sm:$0xff]  ;;  %v571_v37 = vld [vmem:[%s1260_s19 + $0x60] sm:$0xff]  ;;  %v574_v38 = vld [vmem:[%s1260_s19 + $0x78] sm:$0xff]  ;;  %v377_v40 = vunpack.c.h.s8.bf16 %v371_v30  ;;  %v381_v41 = vunpack.c.h.s8.bf16 %v373_v31 }
  0x4a   : > { %592 = vperm.xlu1 %1053, %v562_v16   ;;  %582 = vperm.xlu0 %1052, %v560_v17   ;;  %v573_v39 = vld [vmem:[%s1260_s19 + $0x70] sm:$0xff]  ;;  %v545_v55 = vld [vmem:[#allocation2 + $0x58] sm:$0xff]  ;;  %v551_v0 = vld [vmem:[#allocation2 + $0x40] sm:$0xff] }
  0x4b   : > { %v553_v57 = vld [vmem:[#allocation2 + $0x10] sm:$0xff]  ;;  %v546_v6 = vld [vmem:[#allocation2 + $0x18] sm:$0xff]  ;;  %v544_v15 = vld [vmem:[#allocation2] sm:$0xff] }
  0x4c   : > { %932 = vmatpush3.bf16.msra.mxu0 %v1056_v8  ;;  %969 = vmatpush3.bf16.msra.mxu1 %v1056_v8  ;;  %v543_v62 = vld [vmem:[#allocation2 + $0x30] sm:$0xff]  ;;  %v554_v8 = vld [vmem:[#allocation2 + $0x38] sm:$0xff]  ;;  %v552_v17 = vld [vmem:[#allocation2 + $0x20] sm:$0xff] }
  0x4d   : > { %933 = vmatprep.subr.bf16.mxu0 %v1057_v9  ;;  %962 = vmatprep.subr.bf16.mxu1 %v1057_v9 }
  0x4e   : > { %602 = vperm.xlu1 %1053, %v564_v19   ;;  %597 = vperm.xlu0 %1052, %v563_v20  }
  0x50   : > { %934 = vmatpush3.bf16.msra.mxu0 %v1057_v9  ;;  %970 = vmatpush3.bf16.msra.mxu1 %v1057_v9 }
  0x51   : > { %935 = vmatprep.subr.bf16.mxu0 %v1058_v18  ;;  %963 = vmatprep.subr.bf16.mxu1 %v1058_v18 }
  0x52   : > { %612 = vperm.xlu1 %1053, %v566_v22   ;;  %607 = vperm.xlu0 %1052, %v565_v23  }
  0x54   : > { %936 = vmatpush3.bf16.msra.mxu0 %v1058_v18  ;;  %971 = vmatpush3.bf16.msra.mxu1 %v1058_v18 }
  0x55   : > { %937 = vmatprep.subr.bf16.mxu0 %v1059_v21  ;;  %964 = vmatprep.subr.bf16.mxu1 %v1059_v21 }
  0x56   : > { %622 = vperm.xlu1 %1053, %v568_v25   ;;  %617 = vperm.xlu0 %1052, %v567_v26   ;;  %v557_v26 = vld [vmem:[#allocation2 + $0x78] sm:$0xff] }
  0x58   : > { %938 = vmatpush3.bf16.msra.mxu0 %v1059_v21  ;;  %972 = vmatpush3.bf16.msra.mxu1 %v1059_v21 }
  0x59   : > { %939 = vmatprep.subr.bf16.mxu0 %v1060_v24  ;;  %965 = vmatprep.subr.bf16.mxu1 %v1060_v24 }
  0x5a   : > { %632 = vperm.xlu1 %1053, %v570_v28   ;;  %627 = vperm.xlu0 %1052, %v569_v29  }
  0x5c   : > { %940 = vmatpush3.bf16.msra.mxu0 %v1060_v24  ;;  %973 = vmatpush3.bf16.msra.mxu1 %v1060_v24  ;;  %v549_v24 = vld [vmem:[#allocation2 + $0x8] sm:$0xff] }
  0x5d   : > { %941 = vmatprep.subr.bf16.mxu0 %v1061_v27  ;;  %966 = vmatprep.subr.bf16.mxu1 %v1061_v27 }
  0x5e   : > { %642 = vperm.xlu1 %1053, %v572_v36   ;;  %637 = vperm.xlu0 %1052, %v571_v37  }
  0x60   : > { %942 = vmatpush3.bf16.msra.mxu0 %v1061_v27  ;;  %974 = vmatpush3.bf16.msra.mxu1 %v1061_v27 }
  0x62   : > { %652 = vperm.xlu1 %1053, %v574_v38   ;;  %647 = vperm.xlu0 %1052, %v573_v39  }
  0x63   : > { %944 = vmatmul.mubr.bf16.vlgmr.msra.gmra.mxu0 %v375_v32  ;;  %952 = vmatmul.mubr.bf16.vlgmr.msra.gmra.mxu1 %v379_v33  ;;  %v547_v32 = vld [vmem:[#allocation2 + $0x50] sm:$0xff] }
  0x64   : > { %947 = vmatprep.mubr.bf16.mxu0 %v376_v34  ;;  %955 = vmatprep.mubr.bf16.mxu1 %v380_v35  ;;  %v555_v34 = vld [vmem:[#allocation2 + $0x60] sm:$0xff] }
  0x6b   : > { %948 = vmatmul.mubr.bf16.gmra.mxu0 %v377_v40  ;;  %956 = vmatmul.mubr.bf16.gmra.mxu1 %v381_v41  ;;  %v550_v41 = vld [vmem:[#allocation2 + $0x48] sm:$0xff] }
  0xc1   : > { %v578_v42 = vpop.permute.xlu0 %577  ;;  %v588_v43 = vpop.permute.xlu1 %587 }
  0xc5   : > { %v583_v44 = vpop.permute.xlu0 %582  ;;  %v593_v45 = vpop.permute.xlu1 %592 }
  0xc9   : > { %v1312_v46 = vpop.permute.xlu0 %597  ;;  %v1314_v47 = vpop.permute.xlu1 %602 }
  0xcd   : > { %v608_v48 = vpop.permute.xlu0 %607  ;;  %v1316_v49 = vpop.permute.xlu1 %612 }
  0xd1   : > { %v618_v50 = vpop.permute.xlu0 %617  ;;  %v623_v51 = vpop.permute.xlu1 %622 }
  0xd5   : > { %v628_v52 = vpop.permute.xlu0 %627  ;;  %v633_v53 = vpop.permute.xlu1 %632 }
  0xd9   : > { %v638_v58 = vpop.permute.xlu0 %637  ;;  %v643_v9 = vpop.permute.xlu1 %642 }
  0xdd   : > { %v648_v18 = vpop.permute.xlu0 %647  ;;  %v653_v35 = vpop.permute.xlu1 %652 }
 0x123   : > { %v945_v54 = vpop.f32.mrf.mxu0  ;;  %v953_v56 = vpop.f32.mrf.mxu1 }
 0x124   : > { %v657_v59 = vmul.f32 %v945_v54, %v588_v43  ;;  %v665_v60 = vmul.f32 %v953_v56, %v628_v52  ;;  %v558_v43 = vld [vmem:[#allocation2 + $0x28] sm:$0xff]  ;;  %v556_v54 = vld [vmem:[#allocation2 + $0x70] sm:$0xff] }
 0x125   : > { %v480_v61 = vpop.f32.mrf.mxu0  ;;  %v512_v63 = vpop.f32.mrf.mxu1  ;;  %v548_v52 = vld [vmem:[#allocation2 + $0x68] sm:$0xff] }
 0x126   : > { %v673_v1 = vadd.f32 %v657_v59, %v545_v55  ;;  %v681_v2 = vadd.f32 %v665_v60, %v553_v57  ;;  %v655_v3 = vmul.f32 %v578_v42, %v480_v61  ;;  %v663_v4 = vmul.f32 %v618_v50, %v512_v63 }
 0x127   : > { %v946_v5 = vpop.f32.mrf.mxu0  ;;  %v954_v7 = vpop.f32.mrf.mxu1 }
 0x128   : > { %689 = vst [vmem:[#allocation2 + $0x58] sm:$0xff] %v673_v1  ;;  %697 = vst [vmem:[#allocation2 + $0x10] sm:$0xff] %v681_v2  ;;  %v671_v10 = vadd.f32 %v655_v3, %v543_v62  ;;  %v679_v11 = vadd.f32 %v663_v4, %v551_v0  ;;  %v658_v12 = vmul.f32 %v946_v5, %v593_v45 }
 0x129   : > { %v666_v13 = vmul.f32 %v954_v7, %v633_v53  ;;  %v483_v14 = vpop.f32.mrf.mxu0  ;;  %v515_v16 = vpop.f32.mrf.mxu1 }
 0x12a   : > { %687 = vst [vmem:[#allocation2 + $0x30] sm:$0xff] %v671_v10  ;;  %695 = vst [vmem:[#allocation2 + $0x40] sm:$0xff] %v679_v11  ;;  %v674_v19 = vadd.f32 %v658_v12, %v546_v6  ;;  %v656_v21 = vmul.f32 %v583_v44, %v483_v14  ;;  %v664_v22 = vmul.f32 %v623_v51, %v515_v16 }
 0x12b   : > { %v682_v20 = vadd.f32 %v666_v13, %v554_v8  ;;  %v949_v23 = vpop.f32.mrf.mxu0  ;;  %v957_v25 = vpop.f32.mrf.mxu1 }
 0x12c   : > { %690 = vst [vmem:[#allocation2 + $0x18] sm:$0xff] %v674_v19  ;;  %v672_v27 = vadd.f32 %v656_v21, %v544_v15  ;;  %v680_v28 = vadd.f32 %v664_v22, %v552_v17  ;;  %v661_v29 = vmul.f32 %v949_v23, %v608_v48  ;;  %v669_v30 = vmul.f32 %v957_v25, %v648_v18 }
 0x12d   : > { %698 = vst [vmem:[#allocation2 + $0x38] sm:$0xff] %v682_v20  ;;  %v496_v31 = vpop.f32.mrf.mxu0  ;;  %v528_v33 = vpop.f32.mrf.mxu1 }
 0x12e   : > { %688 = vst [vmem:[#allocation2] sm:$0xff] %v672_v27  ;;  %696 = vst [vmem:[#allocation2 + $0x20] sm:$0xff] %v680_v28  ;;  %v677_v36 = vadd.f32 %v661_v29, %v549_v24  ;;  %v685_v37 = vadd.f32 %v669_v30, %v557_v26  ;;  %v659_v38 = vmul.f32 %v1312_v46, %v496_v31 }
 0x12f   : > { %v667_v39 = vmul.f32 %v638_v58, %v528_v33  ;;  %v950_v40 = vpop.f32.mrf.mxu0  ;;  %v958_v42 = vpop.f32.mrf.mxu1 }
 0x130   : > { %693 = vst [vmem:[#allocation2 + $0x8] sm:$0xff] %v677_v36  ;;  %701 = vst [vmem:[#allocation2 + $0x78] sm:$0xff] %v685_v37  ;;  %v675_v44 = vadd.f32 %v659_v38, %v547_v32  ;;  %v662_v48 = vmul.f32 %v950_v40, %v1316_v49  ;;  %v670_v50 = vmul.f32 %v958_v42, %v653_v35 }
 0x131   : > { %v683_v45 = vadd.f32 %v667_v39, %v555_v34  ;;  %v499_v51 = vpop.f32.mrf.mxu0  ;;  %v531_v53 = vpop.f32.mrf.mxu1 }
 0x132   : > { %691 = vst [vmem:[#allocation2 + $0x50] sm:$0xff] %v675_v44  ;;  %v678_v55 = vadd.f32 %v662_v48, %v550_v41  ;;  %v686_v46 = vadd.f32 %v670_v50, %v558_v43  ;;  %v660_v56 = vmul.f32 %v1314_v47, %v499_v51  ;;  %v668_v57 = vmul.f32 %v643_v9, %v531_v53  ;;  %708 = sbr.rel (%p1308_p5) target bundleno = 322 (0x142), region = 82 }
 0x133   : > { %699 = vst [vmem:[#allocation2 + $0x60] sm:$0xff] %v683_v45 }
 0x134   : > { %694 = vst [vmem:[#allocation2 + $0x48] sm:$0xff] %v678_v55  ;;  %702 = vst [vmem:[#allocation2 + $0x28] sm:$0xff] %v686_v46  ;;  %v676_v58 = vadd.f32 %v660_v56, %v548_v52  ;;  %v684_v59 = vadd.f32 %v668_v57, %v556_v54 }
 0x136   : > { %692 = vst [vmem:[#allocation2 + $0x68] sm:$0xff] %v676_v58  ;;  %700 = vst [vmem:[#allocation2 + $0x70] sm:$0xff] %v684_v59 }
 0x137   : > { %v709_v49 = vld [vmem:[#allocation2 + $0x30] sm:$0xff]  ;;  %v908_v60 = vld [vmem:[%s1372_s3] ss:$0 sm:$0xff]  ;;  %v711_v63 = vld [vmem:[#allocation2 + $0x58] sm:$0xff] }
 0x138   : > { %v710_v61 = vld [vmem:[#allocation2] sm:$0xff]  ;;  %v732_v62 = vadd.f32 %v908_v60, %v709_v49  ;;  %v712_v0 = vld [vmem:[#allocation2 + $0x18] sm:$0xff]  ;;  %v734_v2 = vadd.f32 %v908_v60, %v711_v63  ;;  %v715_v6 = vld [vmem:[#allocation2 + $0x8] sm:$0xff] }
 0x139   : > { %v733_v47 = vadd.f32 %v908_v60, %v710_v61  ;;  %v713_v1 = vld [vmem:[#allocation2 + $0x50] sm:$0xff]  ;;  %v735_v3 = vadd.f32 %v908_v60, %v712_v0  ;;  %v738_v9 = vadd.f32 %v908_v60, %v715_v6  ;;  %v717_v11 = vld [vmem:[#allocation2 + $0x40] sm:$0xff]  ;;  %v720_v17 = vld [vmem:[#allocation2 + $0x38] sm:$0xff] }
 0x13a   : > { %v736_v4 = vadd.f32 %v908_v60, %v713_v1  ;;  %748 = vst [vmem:[%s1254_s30] sm:$0xff] %v732_v62  ;;  %v718_v12 = vld [vmem:[#allocation2 + $0x20] sm:$0xff]  ;;  %v719_v13 = vld [vmem:[#allocation2 + $0x10] sm:$0xff]  ;;  %750 = vst [vmem:[%s1254_s30 + $0x10] sm:$0xff] %v734_v2  ;;  %v740_v14 = vadd.f32 %v908_v60, %v717_v11  ;;  %v743_v20 = vadd.f32 %v908_v60, %v720_v17 }
 0x13b   : > { %v716_v7 = vld [vmem:[#allocation2 + $0x48] sm:$0xff]  ;;  %749 = vst [vmem:[%s1254_s30 + $0x8] sm:$0xff] %v733_v47  ;;  %751 = vst [vmem:[%s1254_s30 + $0x18] sm:$0xff] %v735_v3  ;;  %v741_v15 = vadd.f32 %v908_v60, %v718_v12  ;;  %v742_v16 = vadd.f32 %v908_v60, %v719_v13  ;;  %v721_v18 = vld [vmem:[#allocation2 + $0x60] sm:$0xff] }
 0x13c   : > { %v739_v10 = vadd.f32 %v908_v60, %v716_v7  ;;  %752 = vst [vmem:[%s1254_s30 + $0x20] sm:$0xff] %v736_v4  ;;  %754 = vst [vmem:[%s1254_s30 + $0x30] sm:$0xff] %v738_v9  ;;  %v744_v21 = vadd.f32 %v908_v60, %v721_v18  ;;  %v723_v23 = vld [vmem:[#allocation2 + $0x78] sm:$0xff]  ;;  %v724_v24 = vld [vmem:[#allocation2 + $0x28] sm:$0xff] }
 0x13d   : > { %v714_v5 = vld [vmem:[#allocation2 + $0x68] sm:$0xff]  ;;  %v722_v19 = vld [vmem:[#allocation2 + $0x70] sm:$0xff]  ;;  %756 = vst [vmem:[%s1254_s30 + $0x40] sm:$0xff] %v740_v14  ;;  %757 = vst [vmem:[%s1254_s30 + $0x48] sm:$0xff] %v741_v15  ;;  %v746_v25 = vadd.f32 %v908_v60, %v723_v23  ;;  %v747_v26 = vadd.f32 %v908_v60, %v724_v24 }
 0x13e   : > { %v737_v8 = vadd.f32 %v908_v60, %v714_v5  ;;  %755 = vst [vmem:[%s1254_s30 + $0x38] sm:$0xff] %v739_v10  ;;  %v745_v22 = vadd.f32 %v908_v60, %v722_v19  ;;  %758 = vst [vmem:[%s1254_s30 + $0x50] sm:$0xff] %v742_v16 }
 0x13f   : > { %759 = vst [vmem:[%s1254_s30 + $0x58] sm:$0xff] %v743_v20  ;;  %760 = vst [vmem:[%s1254_s30 + $0x60] sm:$0xff] %v744_v21 }
 0x140   : > { %753 = vst [vmem:[%s1254_s30 + $0x28] sm:$0xff] %v737_v8  ;;  %761 = vst [vmem:[%s1254_s30 + $0x68] sm:$0xff] %v745_v22 }
 0x141   : > { %762 = vst [vmem:[%s1254_s30 + $0x70] sm:$0xff] %v746_v25  ;;  %763 = vst [vmem:[%s1254_s30 + $0x78] sm:$0xff] %v747_v26 }
 0x142 PF: > { %s14_s23 = sadd.s32 1, %s1132_s23   ;;  %s1380_s26 = sld [smem:[#allocation4_spill]] }
 0x143   : > { %p11_p6 = scmp.ge.s32.totalorder %s14_s23, 38   ;;  %s1381_s15 = smov %s1104_s16 }
 0x144   : > { %s1382_s16 = smov %s1232_s8  ;;  %s1383_s17 = smov %s1120_s20 }
 0x145   : > { %s1384_s18 = smov %s1124_s21  ;;  %s1385_s19 = smov %s1128_s22 }
 0x146   : > { %s1386_s20 = smov %s1396_s24  ;;  %s1387_s21 = smov %s1392_s25 }
 0x147   :  { %13 = sbr.rel (!%p11_p6) target bundleno = 7 (0x7), region = 123 }
 0x148   : > { %s1388_s22 = smov %s1380_s26 }

</bundles_post_ra>
